<compile_context>
chip_gen: v7x
topology: tpu7x:2x2x1
jax: 0.10.0
libtpu: 0.0.40
codegen_flags: <defaults>
</compile_context>

<pallas_src>
import functools
import numpy as np
import jax
import jax.numpy as jnp
from jax.experimental import pallas as pl
from jax.experimental.pallas import tpu as pltpu


# ---------------------------------------------------------------------------
# layout helpers
# ---------------------------------------------------------------------------
def _round_up(x, m):
    return ((x + m - 1) // m) * m


def _divisors(n):
    return [d for d in range(1, n + 1) if n % d == 0]


def _choose_layout(h, w, max_lanes=8192, min_lanes=512):
    """Pick (wc, th): row stride wc >= w+2 and band height th | h such that
    the band tile th*wc is lane-aligned (%128 == 0) and <= max_lanes.
    Prefers the smallest wc (least lane waste) and, when possible, >=2 bands
    (keeps both v7x TensorCores busy even at batch 1)."""
    divs = sorted(_divisors(h), reverse=True)
    for wc in range(w + 2, w + 2 + 64):
        valid = [th for th in divs
                 if th * wc <= max_lanes and (th * wc) % 128 == 0]
        if not valid:
            continue
        multi = [th for th in valid if th < h and th * wc >= min_lanes]
        th = multi[0] if multi else valid[0]
        return wc, th
    # Fallback: minimal stride, largest band that fits.  Output stores may be
    # lane-misaligned (masked vst) but everything stays correct.
    wc = w + 2
    for th in divs:
        if th * wc <= max_lanes:
            return wc, th
    return wc, 1


def _choose_conv_tile(hw, max_tile=8192):
    if hw <= max_tile:
        return hw
    t = (max_tile // 128) * 128
    while t >= 128:
        if hw % t == 0:
            return t
        t -= 128
    # TODO(synk): huge H*W with no 128-multiple divisor falls back to one
    # full-extent tile; a remainder-handling grid would bound VMEM here too.
    return hw


def _to_banded_work(t_flat, h, w, wc, th):
    """(N, C, H*W) -> (N*nb, C, th*wc): row-strided work layout, banded."""
    n, c, _ = t_flat.shape
    nb = h // th
    img = t_flat.reshape(n, c, h, w)
    img = jnp.pad(img, ((0, 0), (0, 0), (0, 0), (0, wc - w)))
    img = img.reshape(n, c, nb, th, wc).transpose(0, 2, 1, 3, 4)
    return img.reshape(n * nb, c, th * wc)


def _to_banded_padded(t_flat, h, w, wc, th, lb):
    """(N, C, H*W) -> (N*nb, C, lb): reflect-padded source, row stride wc,
    banded with a 1-row halo on each side of every band."""
    n, c, _ = t_flat.shape
    nb = h // th
    img = t_flat.reshape(n, c, h, w)
    img = jnp.pad(img, ((0, 0), (0, 0), (1, 1), (1, 1)), mode='reflect')
    img = jnp.pad(img, ((0, 0), (0, 0), (0, 0), (0, wc - (w + 2))))  # (n,c,h+2,wc)
    bands = jnp.stack([img[:, :, t * th:t * th + th + 2, :] for t in range(nb)],
                      axis=1)                                        # (n,nb,c,th+2,wc)
    bands = bands.reshape(n, nb, c, (th + 2) * wc)
    bands = jnp.pad(bands, ((0, 0), (0, 0), (0, 0), (0, lb - (th + 2) * wc)))
    return bands.reshape(n * nb, c, lb)


# ---------------------------------------------------------------------------
# Pallas kernel 1: fused 1x1 convs over x, p, g (single pass, single launch).
#   out channels = [x1 | p | g | x2 | p | g | x3]  (block-structured weights)
# ---------------------------------------------------------------------------
def _fused_pw_kernel(x_ref, p_ref, g_ref, wx_ref, wp_ref, wg_ref, b_ref, o_ref):
    acc = jnp.dot(wx_ref[...], x_ref[0], preferred_element_type=jnp.float32)
    acc = acc + jnp.dot(wp_ref[...], p_ref[0], preferred_element_type=jnp.float32)
    acc = acc + jnp.dot(wg_ref[...], g_ref[0], preferred_element_type=jnp.float32)
    o_ref[0] = acc + b_ref[...]


def fused_pointwise_conv(x_cf, p_cf, g_cf, wx, wp, wg, bias, *, max_tile=8192):
    n, cin, hw = x_cf.shape
    cg = g_cf.shape[1]
    cout = wx.shape[0]
    tile = _choose_conv_tile(hw, max_tile)
    return pl.pallas_call(
        _fused_pw_kernel,
        out_shape=jax.ShapeDtypeStruct((n, cout, hw), jnp.float32),
        grid_spec=pltpu.PrefetchScalarGridSpec(
            num_scalar_prefetch=0,
            grid=(n, hw // tile),
            in_specs=[
                pl.BlockSpec((1, cin, tile), lambda b, t: (b, 0, t)),
                pl.BlockSpec((1, 2, tile), lambda b, t: (0, 0, t)),   # p: batch 1
                pl.BlockSpec((1, cg, tile), lambda b, t: (b, 0, t)),
                pl.BlockSpec((cout, cin), lambda b, t: (0, 0)),
                pl.BlockSpec((cout, 2), lambda b, t: (0, 0)),
                pl.BlockSpec((cout, cg), lambda b, t: (0, 0)),
                pl.BlockSpec((cout, 1), lambda b, t: (0, 0)),
            ],
            out_specs=pl.BlockSpec((1, cout, tile), lambda b, t: (b, 0, t))),
        compiler_params=pltpu.CompilerParams(
            dimension_semantics=("parallel", "parallel")),
    )(x_cf, p_cf, g_cf, wx, wp, wg, bias.reshape(cout, 1))


# ---------------------------------------------------------------------------
# Pallas kernel 2: fused subtraction + conv_w (BN/ReLU/1x1/BN/ReLU/1x1)
#                  + softmax over 3x3 + aggregation, per row band.
# Neighbors are static lane-shifted slices of the reflect-padded banded source
# (row stride wc); the 9 neighbors are processed one at a time so the working
# set stays O(Cw x TILE) — no (Cw, 9*L) scratch.
# ---------------------------------------------------------------------------
def _gaa_kernel(cen_ref, nbs_ref, x3s_ref, w1_ref, w2_ref,
                s1_ref, h1_ref, h2_ref, b2_ref, o_ref, *, offsets, tb):
    K = len(offsets)

    # Hoisted BN1: a = s1*center + h1 ; neighbor source pre-scaled once.
    s1 = s1_ref[...]                               # (Cw, 1)
    a = cen_ref[0] * s1 + h1_ref[...]              # (Cw, TB)
    nbs = nbs_ref[0] * s1                          # (Cw, LB)
    w1 = w1_ref[...]                               # (rel, Cw)  (BN2 scale folded)
    w2 = w2_ref[...]                               # (1, rel)
    h2 = h2_ref[...]                               # (rel, 1)
    b2 = b2_ref[0, 0]                              # SMEM scalar

    # Per-neighbor: feat -> hid -> logit (only the 9 (1, TB) logits are kept).
    logits = []
    for off in offsets:
        feat = jnp.maximum(a - nbs[:, off:off + tb], 0.0)           # (Cw, TB)
        hid = jnp.maximum(
            jnp.dot(w1, feat, preferred_element_type=jnp.float32) + h2, 0.0)
        logits.append(
            jnp.dot(w2, hid, preferred_element_type=jnp.float32) + b2)  # (1, TB)

    # Softmax over the 3x3 axis (per pixel), normalized once at the end.
    mx = logits[0]
    for k in range(1, K):
        mx = jnp.maximum(mx, logits[k])
    es = [jnp.exp(l - mx) for l in logits]
    den = es[0]
    for k in range(1, K):
        den = den + es[k]
    inv = pl.reciprocal(den, approx=True)

    # Aggregation with the x3 neighbors (same shifted-slice trick).
    x3s = x3s_ref[0]                               # (out_c, LB)
    off0 = offsets[0]
    acc = es[0] * x3s[:, off0:off0 + tb]
    for k in range(1, K):
        off = offsets[k]
        acc = acc + es[k] * x3s[:, off:off + tb]
    o_ref[0] = acc * inv


def fused_gaa(cen_b, nbs_b, x3_b, w1, w2, s1, h1, h2, b2, *, wc, tb,
              kernel_size=3):
    nb_total, cw, tb_in = cen_b.shape
    assert tb_in == tb
    lb = nbs_b.shape[2]
    out_c = x3_b.shape[1]
    rel = w1.shape[0]
    offsets = tuple(kh * wc + kw
                    for kh in range(kernel_size) for kw in range(kernel_size))
    kernel = functools.partial(_gaa_kernel, offsets=offsets, tb=tb)
    return pl.pallas_call(
        kernel,
        out_shape=jax.ShapeDtypeStruct((nb_total, out_c, tb), jnp.float32),
        grid_spec=pltpu.PrefetchScalarGridSpec(
            num_scalar_prefetch=0,
            grid=(nb_total,),
            in_specs=[
                pl.BlockSpec((1, cw, tb), lambda i: (i, 0, 0)),
                pl.BlockSpec((1, cw, lb), lambda i: (i, 0, 0)),
                pl.BlockSpec((1, out_c, lb), lambda i: (i, 0, 0)),
                pl.BlockSpec((rel, cw), lambda i: (0, 0)),
                pl.BlockSpec((1, rel), lambda i: (0, 0)),
                pl.BlockSpec((cw, 1), lambda i: (0, 0)),
                pl.BlockSpec((cw, 1), lambda i: (0, 0)),
                pl.BlockSpec((rel, 1), lambda i: (0, 0)),
                pl.BlockSpec(memory_space=pltpu.MemorySpace.SMEM),   # b2 scalar
            ],
            out_specs=pl.BlockSpec((1, out_c, tb), lambda i: (i, 0, 0))),
        compiler_params=pltpu.CompilerParams(
            dimension_semantics=("parallel",)),
    )(cen_b, nbs_b, x3_b, w1, w2, s1, h1, h2, b2)


# ---------------------------------------------------------------------------
# JAX glue: position map, params, forward.
# ---------------------------------------------------------------------------
def position(h, w):
    loc_w = jnp.tile(jnp.linspace(-1.0, 1.0, w)[None, :], (h, 1))
    loc_h = jnp.tile(jnp.linspace(-1.0, 1.0, h)[:, None], (1, w))
    return jnp.stack([loc_w, loc_h], axis=0)[None].astype(jnp.float32)  # (1,2,H,W)


def init_params(key, in_planes, rel_planes, out_planes):
    ks = jax.random.split(key, 13)
    rnd = lambda k, s: jax.random.normal(k, s, jnp.float32) * 0.1
    cw = 2 * rel_planes + 2
    eps = 1e-5
    params = dict(
        w_conv1=rnd(ks[0], (in_planes, rel_planes)), b_conv1=rnd(ks[1], (rel_planes,)),
        w_conv2=rnd(ks[2], (in_planes, rel_planes)), b_conv2=rnd(ks[3], (rel_planes,)),
        w_conv3=rnd(ks[4], (in_planes, out_planes)), b_conv3=rnd(ks[5], (out_planes,)),
        w_convg=rnd(ks[6], (128, rel_planes)),       b_convg=rnd(ks[7], (rel_planes,)),
        w_convp=rnd(ks[8], (2, 2)),                  b_convp=rnd(ks[9], (2,)),
        w_cw1=rnd(ks[10], (rel_planes, cw)),                          # conv_w[2], bias=False
        w_cw2=rnd(ks[11], (1, rel_planes)), b_cw2=rnd(ks[12], (1,)),  # conv_w[5]
        # BatchNorm (inference mode, default stats): scale = 1/sqrt(var+eps), shift = 0
        bn1_scale=(jnp.ones((cw, 1), jnp.float32) / np.sqrt(1.0 + eps)),
        bn1_shift=jnp.zeros((cw, 1), jnp.float32),
        bn2_scale=(jnp.ones((rel_planes, 1), jnp.float32) / np.sqrt(1.0 + eps)),
        bn2_shift=jnp.zeros((rel_planes, 1), jnp.float32),
    )
    return params


def gam4_forward(x, g, params, kernel_size=3, g_compute_dtype=jnp.bfloat16):
    assert kernel_size == 3
    n, cin, h, w = x.shape
    cg = g.shape[1]
    rel = params['w_conv1'].shape[1]
    out_planes = params['w_conv3'].shape[1]
    cw = 2 * rel + 2
    hw = h * w

    # channels-first, lane-dense flat layouts
    x_cf = x.reshape(n, cin, hw)
    # g dominates HBM traffic: feed it (and its weight) to the MXU in bf16
    # with f32 accumulation.  In a real pipeline g would arrive in bf16.
    g_cf = g.reshape(n, cg, hw).astype(g_compute_dtype)
    p_cf = position(h, w).reshape(1, 2, hw)

    # --- one fused conv: output channels [x1 | p | g | x2 | p | g | x3] ----
    cout = 2 * cw + out_planes
    wx = jnp.zeros((cout, cin), jnp.float32)
    wx = wx.at[0:rel].set(params['w_conv1'].T)
    wx = wx.at[cw:cw + rel].set(params['w_conv2'].T)
    wx = wx.at[2 * cw:].set(params['w_conv3'].T)
    wp = jnp.zeros((cout, 2), jnp.float32)
    wp = wp.at[rel:rel + 2].set(params['w_convp'].T)
    wp = wp.at[cw + rel:cw + rel + 2].set(params['w_convp'].T)
    wg = jnp.zeros((cout, cg), jnp.float32)
    wg = wg.at[rel + 2:cw].set(params['w_convg'].T)
    wg = wg.at[cw + rel + 2:2 * cw].set(params['w_convg'].T)
    wg = wg.astype(g_compute_dtype)
    bias = jnp.zeros((cout,), jnp.float32)
    bias = bias.at[0:rel].set(params['b_conv1'])
    bias = bias.at[rel:rel + 2].set(params['b_convp'])
    bias = bias.at[rel + 2:cw].set(params['b_convg'])
    bias = bias.at[cw:cw + rel].set(params['b_conv2'])
    bias = bias.at[cw + rel:cw + rel + 2].set(params['b_convp'])
    bias = bias.at[cw + rel + 2:2 * cw].set(params['b_convg'])
    bias = bias.at[2 * cw:].set(params['b_conv3'])

    y = fused_pointwise_conv(x_cf, p_cf, g_cf, wx, wp, wg, bias)   # (N, cout, HW)

    # --- band + reflect-pad layout for the fused GAA kernel (cheap pre-pass,
    #     only 2*Cw+out channels; cen/nbsrc/x3 are contiguous slices of y) ---
    wc, th = _choose_layout(h, w)
    nb = h // th
    tb = th * wc
    lb = _round_up(tb + 2 * wc + 2, 128)
    cen_b = _to_banded_work(y[:, :cw], h, w, wc, th)               # (N*nb, Cw, TB)
    nbs_b = _to_banded_padded(y[:, cw:2 * cw], h, w, wc, th, lb)   # (N*nb, Cw, LB)
    x3_b = _to_banded_padded(y[:, 2 * cw:], h, w, wc, th, lb)      # (N*nb, out, LB)

    # BN2 scale folds exactly into the conv_w[2] weight (no ReLU in between)
    w1_eff = params['w_cw1'] * params['bn2_scale']                 # (rel, Cw)

    out_b = fused_gaa(cen_b, nbs_b, x3_b,
                      w1_eff, params['w_cw2'],
                      params['bn1_scale'], params['bn1_shift'],
                      params['bn2_shift'],
                      params['b_cw2'].reshape(1, 1),
                      wc=wc, tb=tb, kernel_size=kernel_size)       # (N*nb, out, TB)

    out = out_b.reshape(n, nb, out_planes, th, wc)
    out = out.transpose(0, 2, 1, 3, 4).reshape(n, out_planes, h, wc)
    return out[:, :, :, :w]


# ---------------------------------------------------------------------------
# Pure-JAX reference (same math, no Pallas) for a correctness check
# ---------------------------------------------------------------------------
def _conv1x1_ref(x, w, b):
    return jnp.einsum('nchw,cd->ndhw', x, w) + b[None, :, None, None]


def unfold_neighbors(x, kernel_size=3, pad=1):
    """(N, C, H, W) -> (N, C, k*k, H*W), reflection padded (SAN pad_mode=1)."""
    n, c, h, w = x.shape
    xp = jnp.pad(x, ((0, 0), (0, 0), (pad, pad), (pad, pad)), mode='reflect')
    cols = []
    for dh in range(kernel_size):
        for dw in range(kernel_size):
            cols.append(xp[:, :, dh:dh + h, dw:dw + w].reshape(n, c, h * w))
    return jnp.stack(cols, axis=2)


def gam4_reference(x, g, params, kernel_size=3):
    n, _, h, w = x.shape
    rel = params['w_conv1'].shape[1]
    out_planes = params['w_conv3'].shape[1]
    hw = h * w
    K = kernel_size * kernel_size
    pad = kernel_size // 2

    x1 = _conv1x1_ref(x, params['w_conv1'], params['b_conv1'])
    x2 = _conv1x1_ref(x, params['w_conv2'], params['b_conv2'])
    x3 = _conv1x1_ref(x, params['w_conv3'], params['b_conv3'])
    gr = _conv1x1_ref(g, params['w_convg'], params['b_convg'])
    pp = _conv1x1_ref(position(h, w), params['w_convp'], params['b_convp'])

    sub2 = x1.reshape(n, rel, 1, hw) - unfold_neighbors(x2, kernel_size, pad)
    subp = pp.reshape(1, 2, 1, hw) - unfold_neighbors(pp, kernel_size, pad)
    subg = gr.reshape(n, rel, 1, hw) - unfold_neighbors(gr, kernel_size, pad)
    feat = jnp.concatenate([sub2, jnp.broadcast_to(subp, (n, 2, K, hw)), subg], axis=1)

    s1 = params['bn1_scale'].reshape(1, -1, 1, 1)
    h1 = params['bn1_shift'].reshape(1, -1, 1, 1)
    feat = jnp.maximum(feat * s1 + h1, 0.0)
    hid = jnp.einsum('rc,nckl->nrkl', params['w_cw1'], feat)
    s2 = params['bn2_scale'].reshape(1, -1, 1, 1)
    h2 = params['bn2_shift'].reshape(1, -1, 1, 1)
    hid = jnp.maximum(hid * s2 + h2, 0.0)
    logits = jnp.einsum('or,nrkl->nokl', params['w_cw2'], hid) \
        + params['b_cw2'][None, :, None, None]
    wsm = jax.nn.softmax(logits, axis=-2)                 # (n, 1, K, hw)
    x3_nb = unfold_neighbors(x3, kernel_size, pad)        # (n, out, K, hw)
    out = jnp.sum(wsm * x3_nb, axis=2)
    return out.reshape(n, out_planes, h, w)


if __name__ == "__main__":
    key = jax.random.PRNGKey(0)
    kx, kg, kp = jax.random.split(key, 3)
    N, in_planes, rel_planes, out_planes = 2, 4, 4, 8
    H = W = 16

    x = jax.random.normal(kx, (N, in_planes, H, W), jnp.float32)
    g = jax.random.normal(kg, (N, 128, H, W), jnp.float32)
    params = init_params(kp, in_planes, rel_planes, out_planes)

    out = jax.jit(gam4_forward)(x, g, params)
    out = jax.block_until_ready(out)
    assert out.shape == (N, out_planes, H, W)

    # Tolerance covers the bf16 g-path (f32 accumulation) and the approximate
    # reciprocal used for the softmax denominator; the reference is full f32.
    ref = gam4_reference(x, g, params)
    np.testing.assert_allclose(np.asarray(out), np.asarray(ref),
                               rtol=5e-3, atol=5e-3)
    print("KERNEL_OK")
</pallas_src>

<mosaic_0001>
module attributes {stable_mosaic.version = 11 : i64} {
  func.func @_fused_pw_kernel(%arg0: i32, %arg1: i32, %arg2: memref<1x4x256xf32, #tpu.memory_space<vmem>>, %arg3: memref<1x2x256xf32, #tpu.memory_space<vmem>>, %arg4: memref<1x128x256xbf16, #tpu.memory_space<vmem>>, %arg5: memref<28x4xf32, #tpu.memory_space<vmem>>, %arg6: memref<28x2xf32, #tpu.memory_space<vmem>>, %arg7: memref<28x128xbf16, #tpu.memory_space<vmem>>, %arg8: memref<28x1xf32, #tpu.memory_space<vmem>>, %arg9: memref<1x28x256xf32, #tpu.memory_space<vmem>>) attributes {dimension_semantics = [#tpu.dimension_semantics<parallel>, #tpu.dimension_semantics<parallel>], iteration_bounds = array<i64: 2, 1>, scalar_prefetch = 0 : i64, scratch_operands = 0 : i64, tpu.core_type = #tpu.core_type<tc>, window_params = [{transform_indices = @transform_0, window_bounds = array<i64: 1, 4, 256>}, {transform_indices = @transform_1, window_bounds = array<i64: 1, 2, 256>}, {transform_indices = @transform_2, window_bounds = array<i64: 1, 128, 256>}, {pipeline_mode = #tpu.pipeline_mode<synchronous>, transform_indices = @transform_3, window_bounds = array<i64: 28, 4>}, {pipeline_mode = #tpu.pipeline_mode<synchronous>, transform_indices = @transform_4, window_bounds = array<i64: 28, 2>}, {pipeline_mode = #tpu.pipeline_mode<synchronous>, transform_indices = @transform_5, window_bounds = array<i64: 28, 128>}, {pipeline_mode = #tpu.pipeline_mode<synchronous>, transform_indices = @transform_6, window_bounds = array<i64: 28, 1>}, {transform_indices = @transform_7, window_bounds = array<i64: 1, 28, 256>}]} {
    %c0 = arith.constant 0 : index
    %c0_0 = arith.constant 0 : index
    %0 = vector.load %arg5[%c0, %c0_0] : memref<28x4xf32, #tpu.memory_space<vmem>>, vector<28x4xf32>
    %c0_1 = arith.constant 0 : index
    %c0_2 = arith.constant 0 : index
    %c0_3 = arith.constant 0 : index
    %1 = vector.load %arg2[%c0_1, %c0_2, %c0_3] : memref<1x4x256xf32, #tpu.memory_space<vmem>>, vector<1x4x256xf32>
    %2 = vector.shape_cast %1 : vector<1x4x256xf32> to vector<4x256xf32>
    %cst = arith.constant dense<0.000000e+00> : vector<28x256xf32>
    %3 = tpu.matmul %0, %2, %cst {dimension_numbers = #tpu.dot_dimension_numbers<[1], [0], [0], [1], [0, 0, 1, 1], [], []>} : vector<28x4xf32>, vector<4x256xf32>, vector<28x256xf32> -> vector<28x256xf32>
    %c0_4 = arith.constant 0 : index
    %c0_5 = arith.constant 0 : index
    %4 = vector.load %arg6[%c0_4, %c0_5] : memref<28x2xf32, #tpu.memory_space<vmem>>, vector<28x2xf32>
    %c0_6 = arith.constant 0 : index
    %c0_7 = arith.constant 0 : index
    %c0_8 = arith.constant 0 : index
    %5 = vector.load %arg3[%c0_6, %c0_7, %c0_8] : memref<1x2x256xf32, #tpu.memory_space<vmem>>, vector<1x2x256xf32>
    %6 = vector.shape_cast %5 : vector<1x2x256xf32> to vector<2x256xf32>
    %cst_9 = arith.constant dense<0.000000e+00> : vector<28x256xf32>
    %7 = tpu.matmul %4, %6, %cst_9 {dimension_numbers = #tpu.dot_dimension_numbers<[1], [0], [0], [1], [0, 0, 1, 1], [], []>} : vector<28x2xf32>, vector<2x256xf32>, vector<28x256xf32> -> vector<28x256xf32>
    %8 = arith.addf %3, %7 : vector<28x256xf32>
    %c0_10 = arith.constant 0 : index
    %c0_11 = arith.constant 0 : index
    %9 = vector.load %arg7[%c0_10, %c0_11] : memref<28x128xbf16, #tpu.memory_space<vmem>>, vector<28x128xbf16>
    %c0_12 = arith.constant 0 : index
    %c0_13 = arith.constant 0 : index
    %c0_14 = arith.constant 0 : index
    %10 = vector.load %arg4[%c0_12, %c0_13, %c0_14] : memref<1x128x256xbf16, #tpu.memory_space<vmem>>, vector<1x128x256xbf16>
    %11 = vector.shape_cast %10 : vector<1x128x256xbf16> to vector<128x256xbf16>
    %cst_15 = arith.constant dense<0.000000e+00> : vector<28x256xf32>
    %12 = tpu.matmul %9, %11, %cst_15 {dimension_numbers = #tpu.dot_dimension_numbers<[1], [0], [0], [1], [0, 0, 1, 1], [], []>} : vector<28x128xbf16>, vector<128x256xbf16>, vector<28x256xf32> -> vector<28x256xf32>
    %13 = arith.addf %8, %12 : vector<28x256xf32>
    %c0_16 = arith.constant 0 : index
    %c0_17 = arith.constant 0 : index
    %14 = vector.load %arg8[%c0_16, %c0_17] : memref<28x1xf32, #tpu.memory_space<vmem>>, vector<28x1xf32>
    %15 = vector.broadcast %14 : vector<28x1xf32> to vector<28x256xf32>
    %16 = arith.addf %13, %15 : vector<28x256xf32>
    %c0_18 = arith.constant 0 : index
    %c0_19 = arith.constant 0 : index
    %c0_20 = arith.constant 0 : index
    %17 = vector.load %arg9[%c0_18, %c0_19, %c0_20] : memref<1x28x256xf32, #tpu.memory_space<vmem>>, vector<1x28x256xf32>
    %18 = vector.shape_cast %17 : vector<1x28x256xf32> to vector<28x256xf32>
    %19 = vector.shape_cast %16 : vector<28x256xf32> to vector<1x28x256xf32>
    tpu.vector_store %arg9[%c0_18, %c0_19, %c0_20], %19 {strides = array<i32>} : memref<1x28x256xf32, #tpu.memory_space<vmem>>, vector<1x28x256xf32>,
    return
  }
  func.func @transform_0(%arg0: i32, %arg1: i32) -> (i32, i32, i32) {
    %c0_i32 = arith.constant 0 : i32
    %c0_i32_0 = arith.constant 0 : i32
    return %arg0, %c0_i32, %arg1 : i32, i32, i32
  }
  func.func @transform_1(%arg0: i32, %arg1: i32) -> (i32, i32, i32) {
    %c0_i32 = arith.constant 0 : i32
    %c0_i32_0 = arith.constant 0 : i32
    %c0_i32_1 = arith.constant 0 : i32
    return %c0_i32, %c0_i32_0, %arg1 : i32, i32, i32
  }
  func.func @transform_2(%arg0: i32, %arg1: i32) -> (i32, i32, i32) {
    %c0_i32 = arith.constant 0 : i32
    %c0_i32_0 = arith.constant 0 : i32
    return %arg0, %c0_i32, %arg1 : i32, i32, i32
  }
  func.func @transform_3(%arg0: i32, %arg1: i32) -> (i32, i32) {
    %c0_i32 = arith.constant 0 : i32
    %c0_i32_0 = arith.constant 0 : i32
    %c0_i32_1 = arith.constant 0 : i32
    return %c0_i32, %c0_i32_0 : i32, i32
  }
  func.func @transform_4(%arg0: i32, %arg1: i32) -> (i32, i32) {
    %c0_i32 = arith.constant 0 : i32
    %c0_i32_0 = arith.constant 0 : i32
    %c0_i32_1 = arith.constant 0 : i32
    return %c0_i32, %c0_i32_0 : i32, i32
  }
  func.func @transform_5(%arg0: i32, %arg1: i32) -> (i32, i32) {
    %c0_i32 = arith.constant 0 : i32
    %c0_i32_0 = arith.constant 0 : i32
    %c0_i32_1 = arith.constant 0 : i32
    return %c0_i32, %c0_i32_0 : i32, i32
  }
  func.func @transform_6(%arg0: i32, %arg1: i32) -> (i32, i32) {
    %c0_i32 = arith.constant 0 : i32
    %c0_i32_0 = arith.constant 0 : i32
    %c0_i32_1 = arith.constant 0 : i32
    return %c0_i32, %c0_i32_0 : i32, i32
  }
  func.func @transform_7(%arg0: i32, %arg1: i32) -> (i32, i32, i32) {
    %c0_i32 = arith.constant 0 : i32
    %c0_i32_0 = arith.constant 0 : i32
    return %arg0, %c0_i32, %arg1 : i32, i32, i32
  }
}

module attributes {stable_mosaic.version = 11 : i64} {
  func.func @_gaa_kernel(%arg0: i32, %arg1: memref<1x10x384xf32, #tpu.memory_space<vmem>>, %arg2: memref<1x10x512xf32, #tpu.memory_space<vmem>>, %arg3: memref<1x8x512xf32, #tpu.memory_space<vmem>>, %arg4: memref<4x10xf32, #tpu.memory_space<vmem>>, %arg5: memref<1x4xf32, #tpu.memory_space<vmem>>, %arg6: memref<10x1xf32, #tpu.memory_space<vmem>>, %arg7: memref<10x1xf32, #tpu.memory_space<vmem>>, %arg8: memref<4x1xf32, #tpu.memory_space<vmem>>, %arg9: memref<1x1xf32, #tpu.memory_space<smem>>, %arg10: memref<1x8x384xf32, #tpu.memory_space<vmem>>) attributes {dimension_semantics = [#tpu.dimension_semantics<parallel>], iteration_bounds = array<i64: 2>, scalar_prefetch = 0 : i64, scratch_operands = 0 : i64, tpu.core_type = #tpu.core_type<tc>, window_params = [{transform_indices = @transform_0, window_bounds = array<i64: 1, 10, 384>}, {transform_indices = @transform_1, window_bounds = array<i64: 1, 10, 512>}, {transform_indices = @transform_2, window_bounds = array<i64: 1, 8, 512>}, {pipeline_mode = #tpu.pipeline_mode<synchronous>, transform_indices = @transform_3, window_bounds = array<i64: 4, 10>}, {pipeline_mode = #tpu.pipeline_mode<synchronous>, transform_indices = @transform_4, window_bounds = array<i64: 1, 4>}, {pipeline_mode = #tpu.pipeline_mode<synchronous>, transform_indices = @transform_5, window_bounds = array<i64: 10, 1>}, {pipeline_mode = #tpu.pipeline_mode<synchronous>, transform_indices = @transform_6, window_bounds = array<i64: 10, 1>}, {pipeline_mode = #tpu.pipeline_mode<synchronous>, transform_indices = @transform_7, window_bounds = array<i64: 4, 1>}, {transform_indices = @transform_8, window_bounds = array<i64: 1, 1>}, {transform_indices = @transform_9, window_bounds = array<i64: 1, 8, 384>}]} {
    %c0 = arith.constant 0 : index
    %c0_0 = arith.constant 0 : index
    %0 = vector.load %arg6[%c0, %c0_0] : memref<10x1xf32, #tpu.memory_space<vmem>>, vector<10x1xf32>
    %c0_1 = arith.constant 0 : index
    %c0_2 = arith.constant 0 : index
    %c0_3 = arith.constant 0 : index
    %1 = vector.load %arg1[%c0_1, %c0_2, %c0_3] : memref<1x10x384xf32, #tpu.memory_space<vmem>>, vector<1x10x384xf32>
    %2 = vector.shape_cast %1 : vector<1x10x384xf32> to vector<10x384xf32>
    %3 = vector.broadcast %0 : vector<10x1xf32> to vector<10x384xf32>
    %4 = arith.mulf %2, %3 : vector<10x384xf32>
    %c0_4 = arith.constant 0 : index
    %c0_5 = arith.constant 0 : index
    %5 = vector.load %arg7[%c0_4, %c0_5] : memref<10x1xf32, #tpu.memory_space<vmem>>, vector<10x1xf32>
    %6 = vector.broadcast %5 : vector<10x1xf32> to vector<10x384xf32>
    %7 = arith.addf %4, %6 : vector<10x384xf32>
    %c0_6 = arith.constant 0 : index
    %c0_7 = arith.constant 0 : index
    %c0_8 = arith.constant 0 : index
    %8 = vector.load %arg2[%c0_6, %c0_7, %c0_8] : memref<1x10x512xf32, #tpu.memory_space<vmem>>, vector<1x10x512xf32>
    %9 = vector.shape_cast %8 : vector<1x10x512xf32> to vector<10x512xf32>
    %10 = vector.broadcast %0 : vector<10x1xf32> to vector<10x512xf32>
    %11 = arith.mulf %9, %10 : vector<10x512xf32>
    %c0_9 = arith.constant 0 : index
    %c0_10 = arith.constant 0 : index
    %12 = vector.load %arg4[%c0_9, %c0_10] : memref<4x10xf32, #tpu.memory_space<vmem>>, vector<4x10xf32>
    %c0_11 = arith.constant 0 : index
    %c0_12 = arith.constant 0 : index
    %13 = vector.load %arg5[%c0_11, %c0_12] : memref<1x4xf32, #tpu.memory_space<vmem>>, vector<1x4xf32>
    %c0_13 = arith.constant 0 : index
    %c0_14 = arith.constant 0 : index
    %14 = vector.load %arg8[%c0_13, %c0_14] : memref<4x1xf32, #tpu.memory_space<vmem>>, vector<4x1xf32>
    %c0_15 = arith.constant 0 : index
    %c0_16 = arith.constant 0 : index
    %15 = memref.load %arg9[%c0_15, %c0_16] : memref<1x1xf32, #tpu.memory_space<smem>>
    %16 = vector.extract_strided_slice %11 {offsets = [0, 0], sizes = [10, 384], strides = [1, 1]} : vector<10x512xf32> to vector<10x384xf32>
    %17 = arith.subf %7, %16 : vector<10x384xf32>
    %cst = arith.constant 0.000000e+00 : f32
    %18 = vector.broadcast %cst : f32 to vector<10x384xf32>
    %19 = arith.maximumf %17, %18 : vector<10x384xf32>
    %cst_17 = arith.constant dense<0.000000e+00> : vector<4x384xf32>
    %20 = tpu.matmul %12, %19, %cst_17 {dimension_numbers = #tpu.dot_dimension_numbers<[1], [0], [0], [1], [0, 0, 1, 1], [], []>} : vector<4x10xf32>, vector<10x384xf32>, vector<4x384xf32> -> vector<4x384xf32>
    %21 = vector.broadcast %14 : vector<4x1xf32> to vector<4x384xf32>
    %22 = arith.addf %20, %21 : vector<4x384xf32>
    %cst_18 = arith.constant 0.000000e+00 : f32
    %23 = vector.broadcast %cst_18 : f32 to vector<4x384xf32>
    %24 = arith.maximumf %22, %23 : vector<4x384xf32>
    %cst_19 = arith.constant dense<0.000000e+00> : vector<1x384xf32>
    %25 = tpu.matmul %13, %24, %cst_19 {dimension_numbers = #tpu.dot_dimension_numbers<[1], [0], [0], [1], [0, 0, 1, 1], [], []>} : vector<1x4xf32>, vector<4x384xf32>, vector<1x384xf32> -> vector<1x384xf32>
    %26 = vector.broadcast %15 : f32 to vector<1x384xf32>
    %27 = arith.addf %25, %26 : vector<1x384xf32>
    %28 = vector.extract_strided_slice %11 {offsets = [0, 1], sizes = [10, 384], strides = [1, 1]} : vector<10x512xf32> to vector<10x384xf32>
    %29 = arith.subf %7, %28 : vector<10x384xf32>
    %cst_20 = arith.constant 0.000000e+00 : f32
    %30 = vector.broadcast %cst_20 : f32 to vector<10x384xf32>
    %31 = arith.maximumf %29, %30 : vector<10x384xf32>
    %cst_21 = arith.constant dense<0.000000e+00> : vector<4x384xf32>
    %32 = tpu.matmul %12, %31, %cst_21 {dimension_numbers = #tpu.dot_dimension_numbers<[1], [0], [0], [1], [0, 0, 1, 1], [], []>} : vector<4x10xf32>, vector<10x384xf32>, vector<4x384xf32> -> vector<4x384xf32>
    %33 = vector.broadcast %14 : vector<4x1xf32> to vector<4x384xf32>
    %34 = arith.addf %32, %33 : vector<4x384xf32>
    %cst_22 = arith.constant 0.000000e+00 : f32
    %35 = vector.broadcast %cst_22 : f32 to vector<4x384xf32>
    %36 = arith.maximumf %34, %35 : vector<4x384xf32>
    %cst_23 = arith.constant dense<0.000000e+00> : vector<1x384xf32>
    %37 = tpu.matmul %13, %36, %cst_23 {dimension_numbers = #tpu.dot_dimension_numbers<[1], [0], [0], [1], [0, 0, 1, 1], [], []>} : vector<1x4xf32>, vector<4x384xf32>, vector<1x384xf32> -> vector<1x384xf32>
    %38 = vector.broadcast %15 : f32 to vector<1x384xf32>
    %39 = arith.addf %37, %38 : vector<1x384xf32>
    %40 = vector.extract_strided_slice %11 {offsets = [0, 2], sizes = [10, 384], strides = [1, 1]} : vector<10x512xf32> to vector<10x384xf32>
    %41 = arith.subf %7, %40 : vector<10x384xf32>
    %cst_24 = arith.constant 0.000000e+00 : f32
    %42 = vector.broadcast %cst_24 : f32 to vector<10x384xf32>
    %43 = arith.maximumf %41, %42 : vector<10x384xf32>
    %cst_25 = arith.constant dense<0.000000e+00> : vector<4x384xf32>
    %44 = tpu.matmul %12, %43, %cst_25 {dimension_numbers = #tpu.dot_dimension_numbers<[1], [0], [0], [1], [0, 0, 1, 1], [], []>} : vector<4x10xf32>, vector<10x384xf32>, vector<4x384xf32> -> vector<4x384xf32>
    %45 = vector.broadcast %14 : vector<4x1xf32> to vector<4x384xf32>
    %46 = arith.addf %44, %45 : vector<4x384xf32>
    %cst_26 = arith.constant 0.000000e+00 : f32
    %47 = vector.broadcast %cst_26 : f32 to vector<4x384xf32>
    %48 = arith.maximumf %46, %47 : vector<4x384xf32>
    %cst_27 = arith.constant dense<0.000000e+00> : vector<1x384xf32>
    %49 = tpu.matmul %13, %48, %cst_27 {dimension_numbers = #tpu.dot_dimension_numbers<[1], [0], [0], [1], [0, 0, 1, 1], [], []>} : vector<1x4xf32>, vector<4x384xf32>, vector<1x384xf32> -> vector<1x384xf32>
    %50 = vector.broadcast %15 : f32 to vector<1x384xf32>
    %51 = arith.addf %49, %50 : vector<1x384xf32>
    %52 = vector.extract_strided_slice %11 {offsets = [0, 24], sizes = [10, 384], strides = [1, 1]} : vector<10x512xf32> to vector<10x384xf32>
    %53 = arith.subf %7, %52 : vector<10x384xf32>
    %cst_28 = arith.constant 0.000000e+00 : f32
    %54 = vector.broadcast %cst_28 : f32 to vector<10x384xf32>
    %55 = arith.maximumf %53, %54 : vector<10x384xf32>
    %cst_29 = arith.constant dense<0.000000e+00> : vector<4x384xf32>
    %56 = tpu.matmul %12, %55, %cst_29 {dimension_numbers = #tpu.dot_dimension_numbers<[1], [0], [0], [1], [0, 0, 1, 1], [], []>} : vector<4x10xf32>, vector<10x384xf32>, vector<4x384xf32> -> vector<4x384xf32>
    %57 = vector.broadcast %14 : vector<4x1xf32> to vector<4x384xf32>
    %58 = arith.addf %56, %57 : vector<4x384xf32>
    %cst_30 = arith.constant 0.000000e+00 : f32
    %59 = vector.broadcast %cst_30 : f32 to vector<4x384xf32>
    %60 = arith.maximumf %58, %59 : vector<4x384xf32>
    %cst_31 = arith.constant dense<0.000000e+00> : vector<1x384xf32>
    %61 = tpu.matmul %13, %60, %cst_31 {dimension_numbers = #tpu.dot_dimension_numbers<[1], [0], [0], [1], [0, 0, 1, 1], [], []>} : vector<1x4xf32>, vector<4x384xf32>, vector<1x384xf32> -> vector<1x384xf32>
    %62 = vector.broadcast %15 : f32 to vector<1x384xf32>
    %63 = arith.addf %61, %62 : vector<1x384xf32>
    %64 = vector.extract_strided_slice %11 {offsets = [0, 25], sizes = [10, 384], strides = [1, 1]} : vector<10x512xf32> to vector<10x384xf32>
    %65 = arith.subf %7, %64 : vector<10x384xf32>
    %cst_32 = arith.constant 0.000000e+00 : f32
    %66 = vector.broadcast %cst_32 : f32 to vector<10x384xf32>
    %67 = arith.maximumf %65, %66 : vector<10x384xf32>
    %cst_33 = arith.constant dense<0.000000e+00> : vector<4x384xf32>
    %68 = tpu.matmul %12, %67, %cst_33 {dimension_numbers = #tpu.dot_dimension_numbers<[1], [0], [0], [1], [0, 0, 1, 1], [], []>} : vector<4x10xf32>, vector<10x384xf32>, vector<4x384xf32> -> vector<4x384xf32>
    %69 = vector.broadcast %14 : vector<4x1xf32> to vector<4x384xf32>
    %70 = arith.addf %68, %69 : vector<4x384xf32>
    %cst_34 = arith.constant 0.000000e+00 : f32
    %71 = vector.broadcast %cst_34 : f32 to vector<4x384xf32>
    %72 = arith.maximumf %70, %71 : vector<4x384xf32>
    %cst_35 = arith.constant dense<0.000000e+00> : vector<1x384xf32>
    %73 = tpu.matmul %13, %72, %cst_35 {dimension_numbers = #tpu.dot_dimension_numbers<[1], [0], [0], [1], [0, 0, 1, 1], [], []>} : vector<1x4xf32>, vector<4x384xf32>, vector<1x384xf32> -> vector<1x384xf32>
    %74 = vector.broadcast %15 : f32 to vector<1x384xf32>
    %75 = arith.addf %73, %74 : vector<1x384xf32>
    %76 = vector.extract_strided_slice %11 {offsets = [0, 26], sizes = [10, 384], strides = [1, 1]} : vector<10x512xf32> to vector<10x384xf32>
    %77 = arith.subf %7, %76 : vector<10x384xf32>
    %cst_36 = arith.constant 0.000000e+00 : f32
    %78 = vector.broadcast %cst_36 : f32 to vector<10x384xf32>
    %79 = arith.maximumf %77, %78 : vector<10x384xf32>
    %cst_37 = arith.constant dense<0.000000e+00> : vector<4x384xf32>
    %80 = tpu.matmul %12, %79, %cst_37 {dimension_numbers = #tpu.dot_dimension_numbers<[1], [0], [0], [1], [0, 0, 1, 1], [], []>} : vector<4x10xf32>, vector<10x384xf32>, vector<4x384xf32> -> vector<4x384xf32>
    %81 = vector.broadcast %14 : vector<4x1xf32> to vector<4x384xf32>
    %82 = arith.addf %80, %81 : vector<4x384xf32>
    %cst_38 = arith.constant 0.000000e+00 : f32
    %83 = vector.broadcast %cst_38 : f32 to vector<4x384xf32>
    %84 = arith.maximumf %82, %83 : vector<4x384xf32>
    %cst_39 = arith.constant dense<0.000000e+00> : vector<1x384xf32>
    %85 = tpu.matmul %13, %84, %cst_39 {dimension_numbers = #tpu.dot_dimension_numbers<[1], [0], [0], [1], [0, 0, 1, 1], [], []>} : vector<1x4xf32>, vector<4x384xf32>, vector<1x384xf32> -> vector<1x384xf32>
    %86 = vector.broadcast %15 : f32 to vector<1x384xf32>
    %87 = arith.addf %85, %86 : vector<1x384xf32>
    %88 = vector.extract_strided_slice %11 {offsets = [0, 48], sizes = [10, 384], strides = [1, 1]} : vector<10x512xf32> to vector<10x384xf32>
    %89 = arith.subf %7, %88 : vector<10x384xf32>
    %cst_40 = arith.constant 0.000000e+00 : f32
    %90 = vector.broadcast %cst_40 : f32 to vector<10x384xf32>
    %91 = arith.maximumf %89, %90 : vector<10x384xf32>
    %cst_41 = arith.constant dense<0.000000e+00> : vector<4x384xf32>
    %92 = tpu.matmul %12, %91, %cst_41 {dimension_numbers = #tpu.dot_dimension_numbers<[1], [0], [0], [1], [0, 0, 1, 1], [], []>} : vector<4x10xf32>, vector<10x384xf32>, vector<4x384xf32> -> vector<4x384xf32>
    %93 = vector.broadcast %14 : vector<4x1xf32> to vector<4x384xf32>
    %94 = arith.addf %92, %93 : vector<4x384xf32>
    %cst_42 = arith.constant 0.000000e+00 : f32
    %95 = vector.broadcast %cst_42 : f32 to vector<4x384xf32>
    %96 = arith.maximumf %94, %95 : vector<4x384xf32>
    %cst_43 = arith.constant dense<0.000000e+00> : vector<1x384xf32>
    %97 = tpu.matmul %13, %96, %cst_43 {dimension_numbers = #tpu.dot_dimension_numbers<[1], [0], [0], [1], [0, 0, 1, 1], [], []>} : vector<1x4xf32>, vector<4x384xf32>, vector<1x384xf32> -> vector<1x384xf32>
    %98 = vector.broadcast %15 : f32 to vector<1x384xf32>
    %99 = arith.addf %97, %98 : vector<1x384xf32>
    %100 = vector.extract_strided_slice %11 {offsets = [0, 49], sizes = [10, 384], strides = [1, 1]} : vector<10x512xf32> to vector<10x384xf32>
    %101 = arith.subf %7, %100 : vector<10x384xf32>
    %cst_44 = arith.constant 0.000000e+00 : f32
    %102 = vector.broadcast %cst_44 : f32 to vector<10x384xf32>
    %103 = arith.maximumf %101, %102 : vector<10x384xf32>
    %cst_45 = arith.constant dense<0.000000e+00> : vector<4x384xf32>
    %104 = tpu.matmul %12, %103, %cst_45 {dimension_numbers = #tpu.dot_dimension_numbers<[1], [0], [0], [1], [0, 0, 1, 1], [], []>} : vector<4x10xf32>, vector<10x384xf32>, vector<4x384xf32> -> vector<4x384xf32>
    %105 = vector.broadcast %14 : vector<4x1xf32> to vector<4x384xf32>
    %106 = arith.addf %104, %105 : vector<4x384xf32>
    %cst_46 = arith.constant 0.000000e+00 : f32
    %107 = vector.broadcast %cst_46 : f32 to vector<4x384xf32>
    %108 = arith.maximumf %106, %107 : vector<4x384xf32>
    %cst_47 = arith.constant dense<0.000000e+00> : vector<1x384xf32>
    %109 = tpu.matmul %13, %108, %cst_47 {dimension_numbers = #tpu.dot_dimension_numbers<[1], [0], [0], [1], [0, 0, 1, 1], [], []>} : vector<1x4xf32>, vector<4x384xf32>, vector<1x384xf32> -> vector<1x384xf32>
    %110 = vector.broadcast %15 : f32 to vector<1x384xf32>
    %111 = arith.addf %109, %110 : vector<1x384xf32>
    %112 = vector.extract_strided_slice %11 {offsets = [0, 50], sizes = [10, 384], strides = [1, 1]} : vector<10x512xf32> to vector<10x384xf32>
    %113 = arith.subf %7, %112 : vector<10x384xf32>
    %cst_48 = arith.constant 0.000000e+00 : f32
    %114 = vector.broadcast %cst_48 : f32 to vector<10x384xf32>
    %115 = arith.maximumf %113, %114 : vector<10x384xf32>
    %cst_49 = arith.constant dense<0.000000e+00> : vector<4x384xf32>
    %116 = tpu.matmul %12, %115, %cst_49 {dimension_numbers = #tpu.dot_dimension_numbers<[1], [0], [0], [1], [0, 0, 1, 1], [], []>} : vector<4x10xf32>, vector<10x384xf32>, vector<4x384xf32> -> vector<4x384xf32>
    %117 = vector.broadcast %14 : vector<4x1xf32> to vector<4x384xf32>
    %118 = arith.addf %116, %117 : vector<4x384xf32>
    %cst_50 = arith.constant 0.000000e+00 : f32
    %119 = vector.broadcast %cst_50 : f32 to vector<4x384xf32>
    %120 = arith.maximumf %118, %119 : vector<4x384xf32>
    %cst_51 = arith.constant dense<0.000000e+00> : vector<1x384xf32>
    %121 = tpu.matmul %13, %120, %cst_51 {dimension_numbers = #tpu.dot_dimension_numbers<[1], [0], [0], [1], [0, 0, 1, 1], [], []>} : vector<1x4xf32>, vector<4x384xf32>, vector<1x384xf32> -> vector<1x384xf32>
    %122 = vector.broadcast %15 : f32 to vector<1x384xf32>
    %123 = arith.addf %121, %122 : vector<1x384xf32>
    %124 = arith.maximumf %27, %39 : vector<1x384xf32>
    %125 = arith.maximumf %124, %51 : vector<1x384xf32>
    %126 = arith.maximumf %125, %63 : vector<1x384xf32>
    %127 = arith.maximumf %126, %75 : vector<1x384xf32>
    %128 = arith.maximumf %127, %87 : vector<1x384xf32>
    %129 = arith.maximumf %128, %99 : vector<1x384xf32>
    %130 = arith.maximumf %129, %111 : vector<1x384xf32>
    %131 = arith.maximumf %130, %123 : vector<1x384xf32>
    %132 = arith.subf %27, %131 : vector<1x384xf32>
    %133 = math.exp %132 : vector<1x384xf32>
    %134 = arith.subf %39, %131 : vector<1x384xf32>
    %135 = math.exp %134 : vector<1x384xf32>
    %136 = arith.subf %51, %131 : vector<1x384xf32>
    %137 = math.exp %136 : vector<1x384xf32>
    %138 = arith.subf %63, %131 : vector<1x384xf32>
    %139 = math.exp %138 : vector<1x384xf32>
    %140 = arith.subf %75, %131 : vector<1x384xf32>
    %141 = math.exp %140 : vector<1x384xf32>
    %142 = arith.subf %87, %131 : vector<1x384xf32>
    %143 = math.exp %142 : vector<1x384xf32>
    %144 = arith.subf %99, %131 : vector<1x384xf32>
    %145 = math.exp %144 : vector<1x384xf32>
    %146 = arith.subf %111, %131 : vector<1x384xf32>
    %147 = math.exp %146 : vector<1x384xf32>
    %148 = arith.subf %123, %131 : vector<1x384xf32>
    %149 = math.exp %148 : vector<1x384xf32>
    %150 = arith.addf %133, %135 : vector<1x384xf32>
    %151 = arith.addf %150, %137 : vector<1x384xf32>
    %152 = arith.addf %151, %139 : vector<1x384xf32>
    %153 = arith.addf %152, %141 : vector<1x384xf32>
    %154 = arith.addf %153, %143 : vector<1x384xf32>
    %155 = arith.addf %154, %145 : vector<1x384xf32>
    %156 = arith.addf %155, %147 : vector<1x384xf32>
    %157 = arith.addf %156, %149 : vector<1x384xf32>
    %158 = tpu.reciprocal %157 {approx = true} : vector<1x384xf32> -> vector<1x384xf32>
    %c0_52 = arith.constant 0 : index
    %c0_53 = arith.constant 0 : index
    %c0_54 = arith.constant 0 : index
    %159 = vector.load %arg3[%c0_52, %c0_53, %c0_54] : memref<1x8x512xf32, #tpu.memory_space<vmem>>, vector<1x8x512xf32>
    %160 = vector.shape_cast %159 : vector<1x8x512xf32> to vector<8x512xf32>
    %161 = vector.extract_strided_slice %160 {offsets = [0, 0], sizes = [8, 384], strides = [1, 1]} : vector<8x512xf32> to vector<8x384xf32>
    %162 = vector.broadcast %133 : vector<1x384xf32> to vector<8x384xf32>
    %163 = arith.mulf %162, %161 : vector<8x384xf32>
    %164 = vector.extract_strided_slice %160 {offsets = [0, 1], sizes = [8, 384], strides = [1, 1]} : vector<8x512xf32> to vector<8x384xf32>
    %165 = vector.broadcast %135 : vector<1x384xf32> to vector<8x384xf32>
    %166 = arith.mulf %165, %164 : vector<8x384xf32>
    %167 = arith.addf %163, %166 : vector<8x384xf32>
    %168 = vector.extract_strided_slice %160 {offsets = [0, 2], sizes = [8, 384], strides = [1, 1]} : vector<8x512xf32> to vector<8x384xf32>
    %169 = vector.broadcast %137 : vector<1x384xf32> to vector<8x384xf32>
    %170 = arith.mulf %169, %168 : vector<8x384xf32>
    %171 = arith.addf %167, %170 : vector<8x384xf32>
    %172 = vector.extract_strided_slice %160 {offsets = [0, 24], sizes = [8, 384], strides = [1, 1]} : vector<8x512xf32> to vector<8x384xf32>
    %173 = vector.broadcast %139 : vector<1x384xf32> to vector<8x384xf32>
    %174 = arith.mulf %173, %172 : vector<8x384xf32>
    %175 = arith.addf %171, %174 : vector<8x384xf32>
    %176 = vector.extract_strided_slice %160 {offsets = [0, 25], sizes = [8, 384], strides = [1, 1]} : vector<8x512xf32> to vector<8x384xf32>
    %177 = vector.broadcast %141 : vector<1x384xf32> to vector<8x384xf32>
    %178 = arith.mulf %177, %176 : vector<8x384xf32>
    %179 = arith.addf %175, %178 : vector<8x384xf32>
    %180 = vector.extract_strided_slice %160 {offsets = [0, 26], sizes = [8, 384], strides = [1, 1]} : vector<8x512xf32> to vector<8x384xf32>
    %181 = vector.broadcast %143 : vector<1x384xf32> to vector<8x384xf32>
    %182 = arith.mulf %181, %180 : vector<8x384xf32>
    %183 = arith.addf %179, %182 : vector<8x384xf32>
    %184 = vector.extract_strided_slice %160 {offsets = [0, 48], sizes = [8, 384], strides = [1, 1]} : vector<8x512xf32> to vector<8x384xf32>
    %185 = vector.broadcast %145 : vector<1x384xf32> to vector<8x384xf32>
    %186 = arith.mulf %185, %184 : vector<8x384xf32>
    %187 = arith.addf %183, %186 : vector<8x384xf32>
    %188 = vector.extract_strided_slice %160 {offsets = [0, 49], sizes = [8, 384], strides = [1, 1]} : vector<8x512xf32> to vector<8x384xf32>
    %189 = vector.broadcast %147 : vector<1x384xf32> to vector<8x384xf32>
    %190 = arith.mulf %189, %188 : vector<8x384xf32>
    %191 = arith.addf %187, %190 : vector<8x384xf32>
    %192 = vector.extract_strided_slice %160 {offsets = [0, 50], sizes = [8, 384], strides = [1, 1]} : vector<8x512xf32> to vector<8x384xf32>
    %193 = vector.broadcast %149 : vector<1x384xf32> to vector<8x384xf32>
    %194 = arith.mulf %193, %192 : vector<8x384xf32>
    %195 = arith.addf %191, %194 : vector<8x384xf32>
    %196 = vector.broadcast %158 : vector<1x384xf32> to vector<8x384xf32>
    %197 = arith.mulf %195, %196 : vector<8x384xf32>
    %c0_55 = arith.constant 0 : index
    %c0_56 = arith.constant 0 : index
    %c0_57 = arith.constant 0 : index
    %198 = vector.load %arg10[%c0_55, %c0_56, %c0_57] : memref<1x8x384xf32, #tpu.memory_space<vmem>>, vector<1x8x384xf32>
    %199 = vector.shape_cast %198 : vector<1x8x384xf32> to vector<8x384xf32>
    %200 = vector.shape_cast %197 : vector<8x384xf32> to vector<1x8x384xf32>
    tpu.vector_store %arg10[%c0_55, %c0_56, %c0_57], %200 {strides = array<i32>} : memref<1x8x384xf32, #tpu.memory_space<vmem>>, vector<1x8x384xf32>,
    return
  }
  func.func @transform_0(%arg0: i32) -> (i32, i32, i32) {
    %c0_i32 = arith.constant 0 : i32
    %c0_i32_0 = arith.constant 0 : i32
    %c0_i32_1 = arith.constant 0 : i32
    return %arg0, %c0_i32, %c0_i32_0 : i32, i32, i32
  }
  func.func @transform_1(%arg0: i32) -> (i32, i32, i32) {
    %c0_i32 = arith.constant 0 : i32
    %c0_i32_0 = arith.constant 0 : i32
    %c0_i32_1 = arith.constant 0 : i32
    return %arg0, %c0_i32, %c0_i32_0 : i32, i32, i32
  }
  func.func @transform_2(%arg0: i32) -> (i32, i32, i32) {
    %c0_i32 = arith.constant 0 : i32
    %c0_i32_0 = arith.constant 0 : i32
    %c0_i32_1 = arith.constant 0 : i32
    return %arg0, %c0_i32, %c0_i32_0 : i32, i32, i32
  }
  func.func @transform_3(%arg0: i32) -> (i32, i32) {
    %c0_i32 = arith.constant 0 : i32
    %c0_i32_0 = arith.constant 0 : i32
    %c0_i32_1 = arith.constant 0 : i32
    return %c0_i32, %c0_i32_0 : i32, i32
  }
  func.func @transform_4(%arg0: i32) -> (i32, i32) {
    %c0_i32 = arith.constant 0 : i32
    %c0_i32_0 = arith.constant 0 : i32
    %c0_i32_1 = arith.constant 0 : i32
    return %c0_i32, %c0_i32_0 : i32, i32
  }
  func.func @transform_5(%arg0: i32) -> (i32, i32) {
    %c0_i32 = arith.constant 0 : i32
    %c0_i32_0 = arith.constant 0 : i32
    %c0_i32_1 = arith.constant 0 : i32
    return %c0_i32, %c0_i32_0 : i32, i32
  }
  func.func @transform_6(%arg0: i32) -> (i32, i32) {
    %c0_i32 = arith.constant 0 : i32
    %c0_i32_0 = arith.constant 0 : i32
    %c0_i32_1 = arith.constant 0 : i32
    return %c0_i32, %c0_i32_0 : i32, i32
  }
  func.func @transform_7(%arg0: i32) -> (i32, i32) {
    %c0_i32 = arith.constant 0 : i32
    %c0_i32_0 = arith.constant 0 : i32
    %c0_i32_1 = arith.constant 0 : i32
    return %c0_i32, %c0_i32_0 : i32, i32
  }
  func.func @transform_8(%arg0: i32) -> (i32, i32) {
    %c0_i32 = arith.constant 0 : i32
    %c0_i32_0 = arith.constant 0 : i32
    %c0_i32_1 = arith.constant 0 : i32
    return %c0_i32, %c0_i32_0 : i32, i32
  }
  func.func @transform_9(%arg0: i32) -> (i32, i32, i32) {
    %c0_i32 = arith.constant 0 : i32
    %c0_i32_0 = arith.constant 0 : i32
    %c0_i32_1 = arith.constant 0 : i32
    return %arg0, %c0_i32, %c0_i32_0 : i32, i32, i32
  }
}

</mosaic_0001>

<bundles_post_ra>
// kernel: gam4_forward.2
= control target key start
LH: loop header
LB: loop body
LE: loop exit
PB: predicated region body
PF: predicated region fallthrough
CT: control target
= control target key end

     0   :  { %s1122_s24 = smov 0   ;;  %s1124_s25 = smov 0   ;;  %s1256_s0 = inlined_call_operand.vmem [shape: f32[2,4,256], index: 0, kind: input, shape index: {}]   ;;  %s1257_s1 = inlined_call_operand.vmem [shape: f32[1,2,256], index: 1, kind: input, shape index: {}]   ;;  %s1258_s2 = inlined_call_operand.vmem [shape: bf16[2,128,256], index: 2, kind: input, shape index: {}]   ;;  %s1259_s3 = inlined_call_operand.vmem [shape: f32[28,4], index: 3, kind: input, shape index: {}]   ;;  %s1260_s4 = inlined_call_operand.vmem [shape: f32[28,2], index: 4, kind: input, shape index: {}]   ;;  %s1261_s5 = inlined_call_operand.vmem [shape: bf16[28,128], index: 5, kind: input, shape index: {}]   ;;  %s1262_s6 = inlined_call_operand.vmem [shape: f32[28,1], index: 6, kind: input, shape index: {}]   ;;  %s1263_s7 = inlined_call_operand.vmem [shape: f32[2,28,256], index: 7, kind: output, shape index: {}]  }
   0x1   :  { %s1126_s26 = smov 0  }
   0x2 LB: > { %s29_s27 = sadd.s32 1, %s1074_s25  ;;  %p950_p0 = scmp.ge.s32.totalorder %s1078_s26, 1  ;;  %s1078_s26 = sphi %s1126_s26, %s17_s26   ;;  %s1074_s25 = sphi %s1124_s25, %s1265_s25   ;;  %s1070_s24 = sphi %s1122_s24, %s1264_s24  }
   0x3   : > { %p31_p1 = scmp.ge.s32.totalorder %s29_s27, 2  ;;  %p286_p2 = scmp.lt.s32.totalorder %s1078_s26, 3 }
   0x5   : > { %s1267_s27 = smov (%p31_p1, %s29_s27), 0  ;;  %p287_p3 = pnand %p950_p0, %p286_p2 }
   0x6   : > { %v957_v0 = vld.sshfl [vmem:[%s1257_s1] sm:$0x33 pattern:$0x76325410] (!%p287_p3)  ;;  %vm409_vm0 = vcmask (!%p287_p3), 1041408   ;;  %v1080_v2 = vmov (!%p287_p3), 0.0  }
   0x7   : > { %290 = sbr.rel (%p287_p3) target bundleno = 278 (0x116), region = 48  ;;  %v395_v1 = vcombine.high (!%p287_p3), %v957_v0, %v957_v0  ;;  %478 = vmatprep.mubr.f32.mxu0 (!%p287_p3), %v1080_v2  ;;  %p341_p4 = scmp.lt.s32.totalorder (!%p287_p3), %s1070_s24, 1  ;;  %v382_v3 = vld [vmem:[%s1260_s4] sm:$0xff] (!%p287_p3)  ;;  %vm396_vm1 = vcmask (!%p287_p3), 15360   ;;  %v1081_v4 = vmov (!%p287_p3), 0   ;;  %v383_v5 = vld [vmem:[%s1260_s4 + $0x8] sm:$0xff] (!%p287_p3) }
   0x8   : > { %756 = vmatprep.mubr.bf16.mxu1 (!%p287_p3), %v1081_v4  ;;  %1027 = vset.pattern.permute.xlu0 (!%p287_p3), %v1081_v4  ;;  %v785_v6 = vld [vmem:[%s1262_s6] sm:$0xff] (!%p287_p3)  ;;  %v786_v7 = vld [vmem:[%s1262_s6 + $0x8] sm:$0xff] (!%p287_p3)  ;;  %v787_v8 = vld [vmem:[%s1262_s6 + $0x10] sm:$0xff] (!%p287_p3)  ;;  %vm518_vm2 = vcmask (!%p287_p3), 1043456   ;;  %vm505_vm3 = vcmask (!%p287_p3), 31744  }
   0x9   : > { %958 = vmatprep.subr.msk.mxu0 (!%p287_p3), %vm409_vm0, %v395_v1  ;;  %1028 = vset.pattern.permute.xlu1 (!%p287_p3), %v1081_v4  ;;  %v384_v12 = vld [vmem:[%s1260_s4 + $0x10] sm:$0xff] (!%p287_p3)  ;;  %v385_v17 = vld [vmem:[%s1260_s4 + $0x18] sm:$0xf] (!%p287_p3)  ;;  %v377_v20 = vld [vmem:[%s1259_s3] sm:$0xff] (!%p287_p3) }
   0xa   : > { %959 = vmatpush1.msk.msra.mxu0 (!%p287_p3), %vm409_vm0, %v957_v0  ;;  %791 = vperm.xlu0 (!%p287_p3), %1027, %v785_v6   ;;  %v788_v22 = vld [vmem:[%s1262_s6 + $0x18] sm:$0xf] (!%p287_p3)  ;;  %v378_v24 = vld [vmem:[%s1259_s3 + $0x8] sm:$0xff] (!%p287_p3)  ;;  %v379_v27 = vld [vmem:[%s1259_s3 + $0x10] sm:$0xff] (!%p287_p3) }
   0xb   : > { %960 = vmatmul.mubr.msk.f32.vlgmr.msra.gmra.mrb[0].mxu0 (!%p287_p3), %vm396_vm1, %v382_v3  ;;  %801 = vperm.xlu1 (!%p287_p3), %1028, %v787_v8   ;;  %v380_v30 = vld [vmem:[%s1259_s3 + $0x18] sm:$0xf] (!%p287_p3)  ;;  %v1054_v34 = vld [vmem:[%s1261_s5] sm:$0xff] (!%p287_p3)   ;;  %v1055_v35 = vld [vmem:[%s1261_s5 + $0x8] sm:$0x3f] (!%p287_p3)  }
   0xc   : > { %484 = vmatprep.mubr.f32.mxu0 (!%p287_p3), %v1080_v2 }
   0xe   : > { %s1269_s24 = smov (!%p341_p4, %s1070_s24), 1  ;;  %796 = vperm.xlu0 %1027, %v786_v7  }
   0xf   : > { %s991_s9 = sshll.u32 %s1269_s24, 7  ;;  %s990_s12 = sshll.u32 %s1269_s24, 3  ;;  %961 = vmatmul.mubr.msk.f32.gmra.mrb[2].mxu0 %vm396_vm1, %v383_v5  ;;  %806 = vperm.xlu1 %1028, %v788_v22  }
  0x10   : > { %s1162_s15 = scalar_lea.vmem %s1258_s2, %s991_s9  ;;  %s348_s28 = scalar_lea.vmem %s1256_s0, %s990_s12  ;;  %490 = vmatprep.mubr.f32.mxu0 %v1080_v2 }
  0x11   : > { %v1029_v9 = vld [vmem:[%s1162_s15 + $0x4] ss:$8 sps:$4 sm:$0xff]   ;;  %v1031_v10 = vld [vmem:[%s1162_s15] ss:$8 sps:$4 sm:$0xff]   ;;  %v1032_v11 = vld [vmem:[%s1162_s15 + $0x14] ss:$8 sps:$4 sm:$0xff]  }
  0x12   : > { %724 = vmatprep.subr.bf16.mxu1 %v1029_v9  ;;  %v1034_v13 = vld [vmem:[%s1162_s15 + $0x10] ss:$8 sps:$4 sm:$0xff]   ;;  %v1035_v14 = vld [vmem:[%s1162_s15 + $0x24] ss:$8 sps:$4 sm:$0xff]   ;;  %v1037_v18 = vld [vmem:[%s1162_s15 + $0x20] ss:$8 sps:$4 sm:$0xff]  }
  0x13   : > { %725 = vmatpush1.bf16.msra.mxu1 %v1031_v10  ;;  %v381_v15 = vld [vmem:[%s348_s28] sm:$0xff]  ;;  %962 = vmatmul.mubr.msk.f32.gmra.mrb[4].mxu0 %vm396_vm1, %v384_v12  ;;  %v1039_v19 = vld [vmem:[%s1162_s15 + $0x34] ss:$8 sps:$4 sm:$0xff]   ;;  %v1041_v21 = vld [vmem:[%s1162_s15 + $0x30] ss:$8 sps:$4 sm:$0xff]  }
  0x14   : > { %726 = vmatprep.subr.bf16.mxu1 %v1032_v11  ;;  %v504_v16 = vcombine.high %v381_v15, %v381_v15  ;;  %496 = vmatprep.mubr.f32.mxu0 %v1080_v2  ;;  %v1042_v23 = vld [vmem:[%s1162_s15 + $0x44] ss:$8 sps:$4 sm:$0xff]   ;;  %v1044_v25 = vld [vmem:[%s1162_s15 + $0x40] ss:$8 sps:$4 sm:$0xff]   ;;  %v1045_v26 = vld [vmem:[%s1162_s15 + $0x54] ss:$8 sps:$4 sm:$0xff]  }
  0x15   : > { %v1047_v28 = vld [vmem:[%s1162_s15 + $0x50] ss:$8 sps:$4 sm:$0xff]   ;;  %v1048_v29 = vld [vmem:[%s1162_s15 + $0x64] ss:$8 sps:$4 sm:$0xff]   ;;  %v1050_v31 = vld [vmem:[%s1162_s15 + $0x60] ss:$8 sps:$4 sm:$0xff]  }
  0x16   : > { %964 = vmatprep.subr.msk.mxu0 %vm518_vm2, %v504_v16  ;;  %v1051_v32 = vld [vmem:[%s1162_s15 + $0x74] ss:$8 sps:$4 sm:$0xff]   ;;  %v1053_v33 = vld [vmem:[%s1162_s15 + $0x70] ss:$8 sps:$4 sm:$0xff]   ;;  %s992_s15 = sshll.u32 %s1269_s24, 6 }
  0x17   : > { %727 = vmatpush1.bf16.msra.mxu1 %v1034_v13  ;;  %965 = vmatpush1.msk.msra.mxu0 %vm518_vm2, %v381_v15  ;;  %s1237_s8 = scalar_lea.vmem %s1263_s7, %s992_s15 }
  0x18   : > { %728 = vmatprep.subr.bf16.mxu1 %v1035_v14  ;;  %963 = vmatmul.mubr.msk.f32.gmra.mrb[6].mxu0 %vm396_vm1, %v385_v17 }
  0x19   : > { %587 = vmatprep.mubr.f32.mxu0 %v1080_v2 }
  0x1b   : > { %729 = vmatpush1.bf16.msra.mxu1 %v1037_v18 }
  0x1c   : > { %730 = vmatprep.subr.bf16.mxu1 %v1039_v19  ;;  %966 = vmatmul.mubr.msk.f32.vlgmr.msra.gmra.mrb[0].mxu0 %vm505_vm3, %v377_v20 }
  0x1d   : > { %593 = vmatprep.mubr.f32.mxu0 %v1080_v2 }
  0x1f   : > { %731 = vmatpush1.bf16.msra.mxu1 %v1041_v21 }
  0x20   : > { %732 = vmatprep.subr.bf16.mxu1 %v1042_v23  ;;  %967 = vmatmul.mubr.msk.f32.gmra.mrb[2].mxu0 %vm505_vm3, %v378_v24 }
  0x21   : > { %599 = vmatprep.mubr.f32.mxu0 %v1080_v2 }
  0x23   : > { %733 = vmatpush1.bf16.msra.mxu1 %v1044_v25 }
  0x24   : > { %734 = vmatprep.subr.bf16.mxu1 %v1045_v26  ;;  %968 = vmatmul.mubr.msk.f32.gmra.mrb[4].mxu0 %vm505_vm3, %v379_v27 }
  0x25   : > { %605 = vmatprep.mubr.f32.mxu0 %v1080_v2 }
  0x27   : > { %735 = vmatpush1.bf16.msra.mxu1 %v1047_v28 }
  0x28   : > { %736 = vmatprep.subr.bf16.mxu1 %v1048_v29  ;;  %969 = vmatmul.mubr.msk.f32.gmra.mrb[6].mxu0 %vm505_vm3, %v380_v30 }
  0x2b   : > { %737 = vmatpush1.bf16.msra.mxu1 %v1050_v31 }
  0x2c   : > { %738 = vmatprep.subr.bf16.mxu1 %v1051_v32 }
  0x2f   : > { %739 = vmatpush1.bf16.msra.mxu1 %v1053_v33 }
  0x32   : > { %757 = vmatmul.mubr.bf16.vlgmr.msra.gmra.mrb[0].mxu1 %v1054_v34 }
  0x33   : > { %766 = vmatprep.mubr.bf16.mxu1 %v1081_v4 }
  0x3a   : > { %767 = vmatmul.mubr.bf16.gmra.mrb[4].mxu1 %v1055_v35 }
  0x89   : > { %v792_v44 = vpop.permute.xlu0 %791 }
  0x8a   : > { %v802_v58 = vpop.permute.xlu1 %801 }
  0x8d   : > { %v797_v50 = vpop.permute.xlu0 %796 }
  0x8e   : > { %v807_v3 = vpop.permute.xlu1 %806 }
  0xef   : > { %v589_v36 = vpop.f32.mrb[0].mxu0 }
  0xf0   : > { %v591_v37 = vpop.f32.mrb[1].mxu0 }
  0xf3   : > { %v595_v38 = vpop.f32.mrb[2].mxu0 }
  0xf4   : > { %v597_v39 = vpop.f32.mrb[3].mxu0 }
  0xf7   : > { %v601_v40 = vpop.f32.mrb[4].mxu0 }
  0xf8   : > { %v603_v41 = vpop.f32.mrb[5].mxu0 }
  0xfb   : > { %v607_v42 = vpop.f32.mrb[6].mxu0 }
  0xfc   : > { %v609_v43 = vpop.f32.mrb[7].mxu0 }
 0x105   : > { %v758_v45 = vpop.f32.mrb[0].mxu1 }
 0x106   : > { %v777_v46 = vadd.f32 %v758_v45, %v589_v36  ;;  %v760_v47 = vpop.f32.mrb[1].mxu1 }
 0x107   : > { %v778_v48 = vadd.f32 %v760_v47, %v591_v37  ;;  %v762_v49 = vpop.f32.mrb[2].mxu1 }
 0x108   : > { %v809_v51 = vadd.f32 %v792_v44, %v777_v46  ;;  %v779_v52 = vadd.f32 %v762_v49, %v595_v38  ;;  %v764_v53 = vpop.f32.mrb[3].mxu1 }
 0x109   : > { %v810_v54 = vadd.f32 %v792_v44, %v778_v48  ;;  %v780_v55 = vadd.f32 %v764_v53, %v597_v39 }
 0x10a   : > { %817 = vst [vmem:[%s1237_s8] sm:$0xff] %v809_v51  ;;  %v811_v56 = vadd.f32 %v797_v50, %v779_v52 }
 0x10b   : > { %818 = vst [vmem:[%s1237_s8 + $0x8] sm:$0xff] %v810_v54  ;;  %v812_v57 = vadd.f32 %v797_v50, %v780_v55 }
 0x10c   : > { %819 = vst [vmem:[%s1237_s8 + $0x10] sm:$0xff] %v811_v56 }
 0x10d   : > { %820 = vst [vmem:[%s1237_s8 + $0x18] sm:$0xff] %v812_v57  ;;  %v768_v59 = vpop.f32.mrb[4].mxu1 }
 0x10e   : > { %v781_v60 = vadd.f32 %v768_v59, %v601_v40  ;;  %v770_v61 = vpop.f32.mrb[5].mxu1 }
 0x10f   : > { %v782_v62 = vadd.f32 %v770_v61, %v603_v41  ;;  %v772_v63 = vpop.f32.mrb[6].mxu1 }
 0x110   : > { %v813_v0 = vadd.f32 %v802_v58, %v781_v60  ;;  %v783_v1 = vadd.f32 %v772_v63, %v607_v42  ;;  %v774_v2 = vpop.f32.mrb[7].mxu1 }
 0x111   : > { %v814_v4 = vadd.f32 %v802_v58, %v782_v62  ;;  %v784_v5 = vadd.f32 %v774_v2, %v609_v43 }
 0x112   : > { %821 = vst [vmem:[%s1237_s8 + $0x20] sm:$0xff] %v813_v0  ;;  %v815_v6 = vadd.f32 %v807_v3, %v783_v1 }
 0x113   : > { %822 = vst [vmem:[%s1237_s8 + $0x28] sm:$0xff] %v814_v4  ;;  %v816_v7 = vadd.f32 %v807_v3, %v784_v5 }
 0x114   : > { %823 = vst [vmem:[%s1237_s8 + $0x30] sm:$0xf] %v815_v6 }
 0x115   : > { %824 = vst [vmem:[%s1237_s8 + $0x38] sm:$0xf] %v816_v7 }
 0x116 PF: > { %s17_s26 = sadd.s32 1, %s1078_s26   ;;  %s1264_s24 = smov %s1074_s25 }
 0x117   : > { %p14_p5 = scmp.ge.s32.totalorder %s17_s26, 4   ;;  %s1265_s25 = smov %s1267_s27 }
 0x119   :  { %16 = sbr.rel (!%p14_p5) target bundleno = 2 (0x2), region = 84 }

// kernel: gam4_forward.3
= control target key start
LH: loop header
LB: loop body
LE: loop exit
PB: predicated region body
PF: predicated region fallthrough
CT: control target
= control target key end

     0   :  { %s4544_s11 = smov 0   ;;  %s5561_s0 = inlined_call_operand.vmem [shape: f32[2,10,384], index: 0, kind: input, shape index: {}]   ;;  %s5562_s1 = inlined_call_operand.vmem [shape: f32[2,10,512], index: 1, kind: input, shape index: {}]   ;;  %s5563_s2 = inlined_call_operand.vmem [shape: f32[2,8,512], index: 2, kind: input, shape index: {}]   ;;  %s5564_s3 = inlined_call_operand.vmem [shape: f32[4,10], index: 3, kind: input, shape index: {}]   ;;  %s5565_s4 = inlined_call_operand.vmem [shape: f32[1,4], index: 4, kind: input, shape index: {}]   ;;  %s5566_s5 = inlined_call_operand.vmem [shape: f32[10,1], index: 5, kind: input, shape index: {}]   ;;  %s5567_s6 = inlined_call_operand.vmem [shape: f32[10,1], index: 6, kind: input, shape index: {}]   ;;  %s5568_s7 = inlined_call_operand.vmem [shape: f32[4,1], index: 7, kind: input, shape index: {}]   ;;  %s5569_s8 = inlined_call_operand.<no memory space> [shape: f32[1,1], index: 8, kind: input, shape index: {}]   ;;  %s5570_s9 = inlined_call_operand.vmem [shape: f32[2,8,384], index: 9, kind: output, shape index: {}]  }
   0x1   :  { %14 = sst [smem:[#allocation2]] %s5569_s8 }
   0x2 LB: > { %s4035_s12 = sadd.s32 4294967295, %s4476_s11   ;;  %p4039_p0 = scmp.ge.s32.totalorder %s4476_s11, 1  ;;  %s4476_s11 = sphi %s4544_s11, %s20_s11  }
   0x3   : > { %p308_p1 = scmp.lt.s32.totalorder %s4476_s11, 3 }
   0x5   : > { %p309_p2 = pnand %p4039_p0, %p308_p1 }
   0x7   : > { %312 = sbr.rel (%p309_p2) target bundleno = 2445 (0x98d), region = 56 }
   0xe   : > { %v398_v0 = vld [vmem:[%s5567_s6] sm:$0xff]  ;;  %v4478_v2 = vmov 0   ;;  %v399_v3 = vld [vmem:[%s5567_s6 + $0x8] sm:$0x3]  ;;  %v4479_v6 = vmov 0.0|0.0   ;;  %vm4480_vm0 = vmmov 0  }
   0xf   : > { %v374_v1 = vld [vmem:[%s5566_s5] sm:$0xff]  ;;  %4407 = vset.pattern.permute.xlu1 %v4478_v2  ;;  %4406 = vset.pattern.permute.xlu0 %v4478_v2  ;;  %v375_v4 = vld [vmem:[%s5566_s5 + $0x8] sm:$0x3]  ;;  %v4481_v7 = vmov 0.0   ;;  %p354_p3 = scmp.lt.s32.totalorder %s4035_s12, 1  ;;  %s4482_s30 = smov 127  }
  0x10   : > { %402 = vperm.xlu1 %4407, %v398_v0   ;;  %384 = vperm.xlu0 %4406, %v374_v1   ;;  %v434_v5 = vld [vmem:[%s5568_s7] sm:$0xf]  ;;  %vm457_vm1 = vcmask 1041408   ;;  %vm4483_vm2 = vmmov 1   ;;  %vm453_vm4 = vcmask 80896   ;;  %s4484_s14 = smov 126  }
  0x11   : > { %4299 = vmatprep.subr.bf16.mxu1 %v4479_v6  ;;  %4189 = vmatprep.mubr.msk.f32.mxu1 %vm4480_vm0, %v4481_v7  ;;  %s5610_s12 = smov (!%p354_p3, %s4035_s12), 1  ;;  %vm4640_vm3 = vmpackc.low %vm457_vm1, %vm4483_vm2  ;;  %v4655_v62 = vld [vmem:[%s5564_s3] sm:$0xf]  ;;  %s4485_s8 = smov 104   ;;  %vm791_vm5 = vcmask 1039360   ;;  %vm616_vm6 = vcmask 1043456  }
  0x12   : > { %531 = vmatprep.mubr.f32.mxu0 %v4481_v7  ;;  %s4383_s22 = smul.u32 48, %s5610_s12  ;;  %s4138_s23 = sshll.u32 %s5610_s12, 6  ;;  %vm612_vm7 = vcmask 31744   ;;  %vm1135_vm8 = vcmask 1031168   ;;  %vm1479_vm9 = vcmask 850944   ;;  %vm1823_vm10 = vcmask 842752  }
  0x13   : > { %s4581_s29 = scalar_lea.vmem %s5562_s1, %s4138_s23  ;;  %s4486_s15 = smov 103   ;;  %vm2167_vm11 = vcmask 834560   ;;  %vm2511_vm12 = vcmask 654336   ;;  %vm2855_vm13 = vcmask 646144   ;;  %vm3199_vm14 = vcmask 637952  }
  0x14   : > { %407 = vperm.xlu1 %4407, %v399_v3   ;;  %389 = vperm.xlu0 %4406, %v375_v4   ;;  %s358_s26 = scalar_lea.vmem %s5561_s0, %s4383_s22  ;;  %v417_v11 = vld [vmem:[%s4581_s29 + $0x8] sm:$0xff]  ;;  %v418_v12 = vld [vmem:[%s4581_s29 + $0x10] sm:$0xff]  ;;  %v416_v18 = vld [vmem:[%s4581_s29] sm:$0xff]  ;;  %s4487_s16 = smov 102  }
  0x15   : > { %v376_v8 = vld [vmem:[%s358_s26] sm:$0xff]  ;;  %v377_v9 = vld [vmem:[%s358_s26 + $0x8] sm:$0xff]  ;;  %v378_v10 = vld [vmem:[%s358_s26 + $0x10] sm:$0xff]  ;;  %s4488_s17 = smov 80   ;;  %s4489_s18 = smov 79  }
  0x16   : > { %v379_v21 = vld [vmem:[%s358_s26 + $0x18] sm:$0x3]  ;;  %v380_v22 = vld [vmem:[%s358_s26 + $0x20] sm:$0x3]  ;;  %v381_v23 = vld [vmem:[%s358_s26 + $0x28] sm:$0x3] }
  0x17   : > { %v420_v26 = vld [vmem:[%s4581_s29 + $0x20] sm:$0x3]  ;;  %v421_v27 = vld [vmem:[%s4581_s29 + $0x28] sm:$0x3]  ;;  %v422_v28 = vld [vmem:[%s4581_s29 + $0x30] sm:$0x3] }
  0x18   : > { %450 = vperm.xlu0 %4406, %v434_v5   ;;  %v419_v48 = vld [vmem:[%s4581_s29 + $0x18] sm:$0xff]  ;;  %s4490_s19 = smov 78   ;;  %s435_s22 = sld [smem:[#allocation2]] }
  0x19   : > { %v423_v51 = vld [vmem:[%s4581_s29 + $0x38] sm:$0x3]  ;;  %s4139_s25 = sshll.u32 %s5610_s12, 5  ;;  %s4384_s10 = smul.u32 24, %s5610_s12 }
  0x1a   : > { %s368_s28 = scalar_lea.vmem %s5563_s2, %s4139_s25 }
  0x1b   : > { %v3662_v56 = vld [vmem:[%s368_s28 + $0x18] sm:$0xff] }
  0x8f   : > { %v403_v13 = vpop.permute.xlu1 %402  ;;  %v385_v14 = vpop.permute.xlu0 %384 }
  0x90   : > { %v392_v15 = vmul.f32 %v385_v14, %v376_v8  ;;  %v393_v16 = vmul.f32 %v385_v14, %v377_v9  ;;  %v394_v17 = vmul.f32 %v385_v14, %v378_v10  ;;  %v4586_v19 = vmul.f32 %v417_v11, %v385_v14 }
  0x91   : > { %v4588_v20 = vmul.f32 %v418_v12, %v385_v14  ;;  %v4603_v31 = vmul.f32 %v416_v18, %v385_v14  ;;  %v4644_v60 = vmul.f32 %v419_v48, %v385_v14 }
  0x92   : > { %v4590_v24 = vadd.f32 %v403_v13, %v393_v16  ;;  %v4592_v25 = vadd.f32 %v403_v13, %v394_v17  ;;  %v4597_v29 = vadd.f32 %v403_v13, %v392_v15  ;;  %777 = vrot.lane.b32.xlu1 %v4586_v19, %s4482_s30 }
  0x93   : > { %779 = vrot.lane.b32.xlu0 %v4588_v20, %s4482_s30  ;;  %v390_v30 = vpop.permute.xlu0 %389  ;;  %v408_v35 = vpop.permute.xlu1 %407 }
  0x94   : > { %v395_v32 = vmul.f32 %v390_v30, %v379_v21  ;;  %v396_v33 = vmul.f32 %v390_v30, %v380_v22  ;;  %v397_v34 = vmul.f32 %v390_v30, %v381_v23  ;;  %v4605_v36 = vmul.f32 %v420_v26, %v390_v30 }
  0x95   : > { %v4607_v37 = vmul.f32 %v421_v27, %v390_v30  ;;  %v4609_v38 = vmul.f32 %v422_v28, %v390_v30  ;;  %v437_v39 = vsub.f32 %v4590_v24, %v4586_v19  ;;  %v438_v43 = vsub.f32 %v4592_v25, %v4588_v20 }
  0x96   : > { %v4613_v40 = vadd.f32 %v408_v35, %v395_v32  ;;  %v4615_v41 = vadd.f32 %v408_v35, %v396_v33  ;;  %v4617_v42 = vadd.f32 %v408_v35, %v397_v34  ;;  %v436_v44 = vsub.f32 %v4597_v29, %v4603_v31  ;;  %v4801_v32 = vld [vmem:[%s5565_s4] sm:$0x1] }
  0x97   : > { %787 = vrot.lane.b32.xlu0 %v4609_v38, %s4482_s30  ;;  %785 = vrot.lane.b32.xlu1 %v4607_v37, %s4482_s30  ;;  %v443_v49 = vmax.f32 %v437_v39, 0.0  ;;  %v444_v50 = vmax.f32 %v438_v43, 0.0  ;;  %v4646_v61 = vmul.f32 %v423_v51, %v390_v30  ;;  %v4783_v63 = vpop.permute.xlu0 %450 }
  0x98   : > { %v440_v45 = vsub.f32 %v4615_v41, %v4607_v37  ;;  %v441_v46 = vsub.f32 %v4617_v42, %v4609_v38  ;;  %v439_v47 = vsub.f32 %v4613_v40, %v4605_v36  ;;  %v442_v54 = vmax.f32 %v436_v44, 0.0 }
  0x9a   : > { %v446_v52 = vmax.f32 %v440_v45, 0.0  ;;  %v447_v53 = vmax.f32 %v441_v46, 0.0  ;;  %v445_v55 = vmax.f32 %v439_v47, 0.0 }
  0x9b   : > { %783 = vrot.lane.b32.xlu0 %v4605_v36, %s4482_s30  ;;  %775 = vrot.lane.b32.xlu1 %v4603_v31, %s4482_s30 }
  0x9c   : > { %v4293_v57 = vpack.c.bf16 %v446_v52, %v443_v49  ;;  %v4300_v58 = vpack.c.bf16 %v447_v53, %v444_v50  ;;  %v4296_v59 = vpack.c.bf16 %v445_v55, %v442_v54 }
  0x9e   : > { %4295 = vmatprep.subr.msk.bf16.mxu0 %vm4640_vm3, %v4293_v57  ;;  %4302 = vmatpush3.bf16.msk.msra.mxu1 %vm4640_vm3, %v4300_v58 }
  0x9f   : > { %789 = vrot.lane.b32.xlu0 %v4646_v61, %s4482_s30  ;;  %781 = vrot.lane.b32.xlu1 %v4644_v60, %s4482_s30 }
  0xa0   : > { %4298 = vmatpush1.bf16.msk.msra.mxu0 %vm4640_vm3, %v4296_v59  ;;  %4192 = vmatprep.subr.mxu1 %v4481_v7 }
  0xa1   : > { %4190 = vmatmul.mubr.msk.f32.vlgmr.msra.gmra.mrb[0].mxu1 %vm453_vm4, %v4655_v62 }
  0xa2   : > { %4194 = vmatprep.mubr.msk.f32.mxu1 %vm4480_vm0, %v4481_v7 }
  0xa3   : > { %1123 = vrot.lane.b32.xlu0 %v4588_v20, %s4484_s14  ;;  %1121 = vrot.lane.b32.xlu1 %v4586_v19, %s4484_s14 }
  0xa4   : > { %4048 = vmatmul.mubr.msk.f32.vlgmr.msra.gmra.mrb[0].mxu0 %vm453_vm4, %v4655_v62 }
  0xa5   : > { %690 = vmatprep.mubr.f32.mxu0 %v4481_v7 }
  0xa7   : > { %1131 = vrot.lane.b32.xlu0 %v4609_v38, %s4484_s14  ;;  %1129 = vrot.lane.b32.xlu1 %v4607_v37, %s4484_s14 }
  0xab   : > { %1127 = vrot.lane.b32.xlu0 %v4605_v36, %s4484_s14  ;;  %1119 = vrot.lane.b32.xlu1 %v4603_v31, %s4484_s14 }
  0xaf   : > { %1133 = vrot.lane.b32.xlu0 %v4646_v61, %s4484_s14  ;;  %1125 = vrot.lane.b32.xlu1 %v4644_v60, %s4484_s14 }
  0xb3   : > { %1467 = vrot.lane.b32.xlu0 %v4588_v20, %s4485_s8  ;;  %1465 = vrot.lane.b32.xlu1 %v4586_v19, %s4485_s8 }
  0xb7   : > { %1475 = vrot.lane.b32.xlu0 %v4609_v38, %s4485_s8  ;;  %1473 = vrot.lane.b32.xlu1 %v4607_v37, %s4485_s8 }
  0xbb   : > { %1471 = vrot.lane.b32.xlu0 %v4605_v36, %s4485_s8  ;;  %1463 = vrot.lane.b32.xlu1 %v4603_v31, %s4485_s8 }
  0xbf   : > { %1477 = vrot.lane.b32.xlu0 %v4646_v61, %s4485_s8  ;;  %1469 = vrot.lane.b32.xlu1 %v4644_v60, %s4485_s8 }
  0xc3   : > { %1811 = vrot.lane.b32.xlu0 %v4588_v20, %s4486_s15  ;;  %1809 = vrot.lane.b32.xlu1 %v4586_v19, %s4486_s15 }
  0xc7   : > { %1819 = vrot.lane.b32.xlu0 %v4609_v38, %s4486_s15  ;;  %1817 = vrot.lane.b32.xlu1 %v4607_v37, %s4486_s15 }
  0xcb   : > { %1815 = vrot.lane.b32.xlu0 %v4605_v36, %s4486_s15  ;;  %1807 = vrot.lane.b32.xlu1 %v4603_v31, %s4486_s15 }
  0xcf   : > { %1821 = vrot.lane.b32.xlu0 %v4646_v61, %s4486_s15  ;;  %1813 = vrot.lane.b32.xlu1 %v4644_v60, %s4486_s15 }
  0xd3   : > { %2155 = vrot.lane.b32.xlu0 %v4588_v20, %s4487_s16  ;;  %2153 = vrot.lane.b32.xlu1 %v4586_v19, %s4487_s16 }
  0xd7   : > { %2163 = vrot.lane.b32.xlu0 %v4609_v38, %s4487_s16  ;;  %2161 = vrot.lane.b32.xlu1 %v4607_v37, %s4487_s16 }
  0xdb   : > { %2159 = vrot.lane.b32.xlu0 %v4605_v36, %s4487_s16  ;;  %2151 = vrot.lane.b32.xlu1 %v4603_v31, %s4487_s16 }
  0xdf   : > { %2165 = vrot.lane.b32.xlu0 %v4646_v61, %s4487_s16  ;;  %2157 = vrot.lane.b32.xlu1 %v4644_v60, %s4487_s16 }
  0xe3   : > { %2499 = vrot.lane.b32.xlu0 %v4588_v20, %s4488_s17  ;;  %2497 = vrot.lane.b32.xlu1 %v4586_v19, %s4488_s17 }
  0xe7   : > { %2507 = vrot.lane.b32.xlu0 %v4609_v38, %s4488_s17  ;;  %2505 = vrot.lane.b32.xlu1 %v4607_v37, %s4488_s17 }
  0xeb   : > { %2503 = vrot.lane.b32.xlu0 %v4605_v36, %s4488_s17  ;;  %2495 = vrot.lane.b32.xlu1 %v4603_v31, %s4488_s17 }
  0xef   : > { %2509 = vrot.lane.b32.xlu0 %v4646_v61, %s4488_s17  ;;  %2501 = vrot.lane.b32.xlu1 %v4644_v60, %s4488_s17 }
  0xf3   : > { %2843 = vrot.lane.b32.xlu0 %v4588_v20, %s4489_s18  ;;  %2841 = vrot.lane.b32.xlu1 %v4586_v19, %s4489_s18 }
  0xf7   : > { %2851 = vrot.lane.b32.xlu0 %v4609_v38, %s4489_s18  ;;  %2849 = vrot.lane.b32.xlu1 %v4607_v37, %s4489_s18 }
  0xfb   : > { %2847 = vrot.lane.b32.xlu0 %v4605_v36, %s4489_s18  ;;  %2839 = vrot.lane.b32.xlu1 %v4603_v31, %s4489_s18 }
  0xff   : > { %2853 = vrot.lane.b32.xlu0 %v4646_v61, %s4489_s18  ;;  %2845 = vrot.lane.b32.xlu1 %v4644_v60, %s4489_s18 }
 0x103   : > { %3187 = vrot.lane.b32.xlu0 %v4588_v20, %s4490_s19  ;;  %3185 = vrot.lane.b32.xlu1 %v4586_v19, %s4490_s19 }
 0x104   : > { %v778_v1 = vpop.permute.xlu1 %777 }
 0x105   : > { %v780_v0 = vpop.permute.xlu0 %779 }
 0x106   : > { %v793_v17 = vsel %vm791_vm5, %v778_v1, %v780_v0 }
 0x107   : > { %3195 = vrot.lane.b32.xlu0 %v4609_v38, %s4490_s19  ;;  %3193 = vrot.lane.b32.xlu1 %v4607_v37, %s4490_s19  ;;  %v805_v28 = vsub.f32 %v4590_v24, %v793_v17 }
 0x109   : > { %v788_v2 = vpop.permute.xlu0 %787  ;;  %v786_v3 = vpop.permute.xlu1 %785  ;;  %v811_v43 = vmax.f32 %v805_v28, 0.0 }
 0x10a   : > { %v796_v14 = vsel %vm791_vm5, %v786_v3, %v788_v2 }
 0x10b   : > { %3191 = vrot.lane.b32.xlu0 %v4605_v36, %s4490_s19  ;;  %3183 = vrot.lane.b32.xlu1 %v4603_v31, %s4490_s19  ;;  %v808_v19 = vsub.f32 %v4615_v41, %v796_v14 }
 0x10d   : > { %v784_v4 = vpop.permute.xlu0 %783  ;;  %v776_v5 = vpop.permute.xlu1 %775  ;;  %v814_v35 = vmax.f32 %v808_v19, 0.0 }
 0x10e   : > { %v795_v15 = vsel %vm791_vm5, %v784_v4, %v786_v3  ;;  %v792_v16 = vsel %vm791_vm5, %v776_v5, %v778_v1 }
 0x10f   : > { %3197 = vrot.lane.b32.xlu0 %v4646_v61, %s4490_s19  ;;  %3189 = vrot.lane.b32.xlu1 %v4644_v60, %s4490_s19  ;;  %v807_v23 = vsub.f32 %v4613_v40, %v795_v15  ;;  %v804_v26 = vsub.f32 %v4597_v29, %v792_v16  ;;  %v4303_v46 = vpack.c.bf16 %v814_v35, %v811_v43 }
 0x111   : > { %v790_v8 = vpop.permute.xlu0 %789  ;;  %v782_v9 = vpop.permute.xlu1 %781  ;;  %v813_v38 = vmax.f32 %v807_v23, 0.0  ;;  %v810_v39 = vmax.f32 %v804_v26, 0.0 }
 0x112   : > { %v797_v10 = vsel %vm791_vm5, %v788_v2, %v790_v8  ;;  %v794_v11 = vsel %vm791_vm5, %v780_v0, %v782_v9 }
 0x113   : > { %v809_v12 = vsub.f32 %v4617_v42, %v797_v10  ;;  %v806_v13 = vsub.f32 %v4592_v25, %v794_v11  ;;  %v4306_v47 = vpack.c.bf16 %v813_v38, %v810_v39 }
 0x115   : > { %v815_v20 = vmax.f32 %v809_v12, 0.0  ;;  %v812_v21 = vmax.f32 %v806_v13, 0.0  ;;  %v1124_v48 = vpop.permute.xlu0 %1123  ;;  %v1122_v49 = vpop.permute.xlu1 %1121 }
 0x116   : > { %v1137_v12 = vsel %vm1135_vm8, %v1122_v49, %v1124_v48 }
 0x117   : > { %v4310_v36 = vpack.c.bf16 %v815_v20, %v812_v21 }
 0x119   : > { %v1132_v50 = vpop.permute.xlu0 %1131  ;;  %v1130_v51 = vpop.permute.xlu1 %1129 }
 0x11a   : > { %v1140_v1 = vsel %vm1135_vm8, %v1130_v51, %v1132_v50 }
 0x11b   : > { %v1152_v14 = vsub.f32 %v4615_v41, %v1140_v1 }
 0x11d   : > { %v1128_v52 = vpop.permute.xlu0 %1127  ;;  %v1120_v53 = vpop.permute.xlu1 %1119  ;;  %v1158_v23 = vmax.f32 %v1152_v14, 0.0 }
 0x11e   : > { %v1139_v2 = vsel %vm1135_vm8, %v1128_v52, %v1130_v51  ;;  %v1136_v4 = vsel %vm1135_vm8, %v1120_v53, %v1122_v49  ;;  %v4878_v49 = vstv %s435_s22 }
 0x11f   : > { %v1151_v16 = vsub.f32 %v4613_v40, %v1139_v2  ;;  %v1148_v17 = vsub.f32 %v4597_v29, %v1136_v4 }
 0x121   : > { %v1134_v54 = vpop.permute.xlu0 %1133  ;;  %v1126_v55 = vpop.permute.xlu1 %1125  ;;  %v1154_v28 = vmax.f32 %v1148_v17, 0.0 }
 0x122   : > { %v1141_v57 = vsel %vm1135_vm8, %v1132_v50, %v1134_v54  ;;  %v1138_v58 = vsel %vm1135_vm8, %v1124_v48, %v1126_v55 }
 0x123   : > { %v1153_v60 = vsub.f32 %v4617_v42, %v1141_v57  ;;  %v1150_v61 = vsub.f32 %v4592_v25, %v1138_v58 }
 0x125   : > { %v1159_v5 = vmax.f32 %v1153_v60, 0.0  ;;  %v1156_v8 = vmax.f32 %v1150_v61, 0.0 }
 0x127   : > { %v4320_v19 = vpack.c.bf16 %v1159_v5, %v1156_v8 }
 0x174   : > { %v604_v18 = vpop.f32.mrb[0].mxu1 }
 0x175   : > { %v605_v22 = vadd.f32 %v604_v18, %v4783_v63  ;;  %v4191_v27 = vpop.f32.mrb[1].mxu1  ;;  %v1149_v18 = vsub.f32 %v4590_v24, %v1137_v12 }
 0x176   : > { %v1157_v27 = vmax.f32 %v1151_v16, 0.0 }
 0x177   : > { %v610_v30 = vmax.f32 %v605_v22, 0.0  ;;  %v533_v31 = vpop.f32.mrb[0].mxu0 }
 0x178   : > { %v534_v33 = vadd.f32 %v533_v31, %v4783_v63  ;;  %v535_v34 = vpop.f32.mrb[1].mxu0  ;;  %v4316_v35 = vpack.c.bf16 %v1157_v27, %v1154_v28 }
 0x179   : > { %v536_v37 = vadd.f32 %v535_v34, %v4783_v63  ;;  %4193 = vmatpush3.msk.msra.mxu1 %vm616_vm6, %v610_v30  ;;  %v1155_v30 = vmax.f32 %v1149_v18, 0.0 }
 0x17a   : > { %4195 = vmatmul.mubr.msk.f32.vlgmr.msra.gmra.mrb[2].mxu1 %vm612_vm7, %v4801_v32  ;;  %4309 = vmatprep.subr.bf16.mxu1 %v4479_v6  ;;  %v608_v45 = vmax.f32 %v534_v33, 0.0 }
 0x17b   : > { %v609_v44 = vmax.f32 %v536_v37, 0.0  ;;  %4312 = vmatpush3.bf16.msk.msra.mxu1 %vm4640_vm3, %v4310_v36  ;;  %4201 = vmatprep.mubr.msk.f32.mxu1 %vm4480_vm0, %v4481_v7  ;;  %v4313_v34 = vpack.c.bf16 %v1158_v23, %v1155_v30  ;;  %v1468_v36 = vpop.permute.xlu0 %1467  ;;  %v1466_v37 = vpop.permute.xlu1 %1465 }
 0x17c   : > { %4204 = vmatprep.subr.mxu1 %v4481_v7  ;;  %v1481_v8 = vsel %vm1479_vm9, %v1466_v37, %v1468_v36 }
 0x17d   : > { %4051 = vmatprep.subr.msk.mxu0 %vm616_vm6, %v609_v44 }
 0x17e   : > { %4052 = vmatpush1.msk.msra.mxu0 %vm616_vm6, %v608_v45  ;;  %4202 = vmatmul.mubr.msk.f32.vlgmr.msra.gmra.mrb[4].mxu1 %vm453_vm4, %v4655_v62 }
 0x17f   : > { %4053 = vmatmul.mubr.msk.f32.vlgmr.msra.gmra.mrb[2].mxu0 %vm612_vm7, %v4801_v32  ;;  %4305 = vmatprep.subr.msk.bf16.mxu0 %vm4640_vm3, %v4303_v46  ;;  %v1476_v38 = vpop.permute.xlu0 %1475  ;;  %v1474_v39 = vpop.permute.xlu1 %1473 }
 0x180   : > { %4308 = vmatpush1.bf16.msk.msra.mxu0 %vm4640_vm3, %v4306_v47  ;;  %889 = vmatprep.mubr.f32.mxu0 %v4481_v7  ;;  %v1484_v2 = vsel %vm1479_vm9, %v1474_v39, %v1476_v38 }
 0x181   : > { %4206 = vmatprep.mubr.msk.f32.mxu1 %vm4480_vm0, %v4481_v7  ;;  %v1496_v14 = vsub.f32 %v4615_v41, %v1484_v2 }
 0x183   : > { %4058 = vmatmul.mubr.msk.f32.vlgmr.msra.gmra.mrb[4].mxu0 %vm453_vm4, %v4655_v62  ;;  %v1472_v43 = vpop.permute.xlu0 %1471  ;;  %v1464_v44 = vpop.permute.xlu1 %1463 }
 0x184   : > { %1042 = vmatprep.mubr.f32.mxu0 %v4481_v7 }
 0x187   : > { %v1478_v45 = vpop.permute.xlu0 %1477  ;;  %v1470_v46 = vpop.permute.xlu1 %1469 }
 0x188   : > { %v1485_v47 = vsel %vm1479_vm9, %v1476_v38, %v1478_v45  ;;  %v1482_v48 = vsel %vm1479_vm9, %v1468_v36, %v1470_v46 }
 0x189   : > { %v1497_v51 = vsub.f32 %v4617_v42, %v1485_v47  ;;  %v1494_v52 = vsub.f32 %v4592_v25, %v1482_v48 }
 0x18b   : > { %v1503_v60 = vmax.f32 %v1497_v51, 0.0  ;;  %v1500_v61 = vmax.f32 %v1494_v52, 0.0  ;;  %v1810_v38 = vpop.permute.xlu1 %1809 }
 0x24d   : > { %v4832_v59 = vpop.f32.mrb[2].mxu1 }
 0x24e   : > { %v4196_v0 = vpop.f32.mrb[3].mxu1  ;;  %v4884_v53 = vadd.f32 %v4832_v59, %v4878_v49  ;;  %v1480_v59 = vsel %vm1479_vm9, %v1464_v44, %v1466_v37  ;;  %v1812_v37 = vpop.permute.xlu0 %1811 }
 0x251   : > { %v962_v3 = vpop.f32.mrb[4].mxu1 }
 0x252   : > { %v4839_v9 = vpop.f32.mrb[2].mxu0  ;;  %v963_v10 = vadd.f32 %v962_v3, %v4783_v63  ;;  %v4203_v11 = vpop.f32.mrb[5].mxu1  ;;  %v1483_v3 = vsel %vm1479_vm9, %v1472_v43, %v1474_v39 }
 0x253   : > { %v4843_v13 = vpop.f32.mrb[3].mxu0  ;;  %v1495_v18 = vsub.f32 %v4613_v40, %v1483_v3  ;;  %v1820_v39 = vpop.permute.xlu0 %1819 }
 0x254   : > { %v968_v15 = vmax.f32 %v963_v10, 0.0  ;;  %v4898_v10 = vadd.f32 %v4839_v9, %v4878_v49  ;;  %v4906_v16 = vadd.f32 %v4843_v13, %v4878_v49  ;;  %v1492_v9 = vsub.f32 %v4597_v29, %v1480_v59  ;;  %v1818_v43 = vpop.permute.xlu1 %1817 }
 0x255   : > { %v1493_v13 = vsub.f32 %v4590_v24, %v1481_v8  ;;  %v1501_v28 = vmax.f32 %v1495_v18, 0.0 }
 0x256   : > { %v891_v20 = vpop.f32.mrb[4].mxu0  ;;  %4205 = vmatpush3.msk.msra.mxu1 %vm616_vm6, %v968_v15  ;;  %v4330_v15 = vpack.c.bf16 %v1503_v60, %v1500_v61  ;;  %v1498_v30 = vmax.f32 %v1492_v9, 0.0 }
 0x257   : > { %v892_v21 = vadd.f32 %v891_v20, %v4783_v63  ;;  %v893_v22 = vpop.f32.mrb[5].mxu0  ;;  %4207 = vmatmul.mubr.msk.f32.vlgmr.msra.gmra.mrb[6].mxu1 %vm612_vm7, %v4801_v32  ;;  %4319 = vmatprep.subr.bf16.mxu1 %v4479_v6  ;;  %v1816_v44 = vpop.permute.xlu0 %1815 }
 0x258   : > { %v894_v26 = vadd.f32 %v893_v22, %v4783_v63  ;;  %4322 = vmatpush3.bf16.msk.msra.mxu1 %vm4640_vm3, %v4320_v19  ;;  %4213 = vmatprep.mubr.msk.f32.mxu1 %vm4480_vm0, %v4481_v7  ;;  %v4326_v36 = vpack.c.bf16 %v1501_v28, %v1498_v30  ;;  %v1808_v45 = vpop.permute.xlu1 %1807  ;;  %v1827_v8 = vsel %vm1823_vm10, %v1816_v44, %v1818_v43 }
 0x259   : > { %4216 = vmatprep.subr.mxu1 %v4481_v7  ;;  %v966_v33 = vmax.f32 %v892_v21, 0.0 }
 0x25a   : > { %v967_v31 = vmax.f32 %v894_v26, 0.0  ;;  %v1502_v26 = vmax.f32 %v1496_v14, 0.0 }
 0x25b   : > { %4214 = vmatmul.mubr.msk.f32.vlgmr.msra.gmra.mrb[8].mxu1 %vm453_vm4, %v4655_v62  ;;  %v1822_v46 = vpop.permute.xlu0 %1821 }
 0x25c   : > { %4061 = vmatprep.subr.msk.mxu0 %vm616_vm6, %v967_v31  ;;  %4218 = vmatprep.mubr.msk.f32.mxu1 %vm4480_vm0, %v4481_v7  ;;  %v1499_v31 = vmax.f32 %v1493_v13, 0.0  ;;  %v1814_v47 = vpop.permute.xlu1 %1813  ;;  %v1829_v48 = vsel %vm1823_vm10, %v1820_v39, %v1822_v46 }
 0x25d   : > { %4062 = vmatpush1.msk.msra.mxu0 %vm616_vm6, %v966_v33  ;;  %v1841_v52 = vsub.f32 %v4617_v42, %v1829_v48 }
 0x25e   : > { %4063 = vmatmul.mubr.msk.f32.vlgmr.msra.gmra.mrb[6].mxu0 %vm612_vm7, %v4801_v32  ;;  %4315 = vmatprep.subr.msk.bf16.mxu0 %vm4640_vm3, %v4313_v34 }
 0x25f   : > { %4318 = vmatpush1.bf16.msk.msra.mxu0 %vm4640_vm3, %v4316_v35  ;;  %1233 = vmatprep.mubr.f32.mxu0 %v4481_v7  ;;  %v4323_v35 = vpack.c.bf16 %v1502_v26, %v1499_v31  ;;  %v2156_v44 = vpop.permute.xlu0 %2155 }
 0x262   : > { %4068 = vmatmul.mubr.msk.f32.vlgmr.msra.gmra.mrb[8].mxu0 %vm453_vm4, %v4655_v62 }
 0x263   : > { %1386 = vmatprep.mubr.f32.mxu0 %v4481_v7  ;;  %v2164_v46 = vpop.permute.xlu0 %2163 }
 0x267   : > { %v2160_v48 = vpop.permute.xlu0 %2159 }
 0x32a   : > { %v1115_v50 = vpop.f32.mrb[6].mxu1 }
 0x32b   : > { %v4887_v54 = vadd.f32 %v1115_v50, %v4878_v49  ;;  %v4208_v55 = vpop.f32.mrb[7].mxu1  ;;  %v1826_v50 = vsel %vm1823_vm10, %v1812_v37, %v1814_v47 }
 0x32c   : > { %v1838_v55 = vsub.f32 %v4592_v25, %v1826_v50 }
 0x32d   : > { %v3529_v57 = vmax.f32 %v4884_v53, %v4887_v54 }
 0x32e   : > { %v1306_v58 = vpop.f32.mrb[8].mxu1  ;;  %v1844_v2 = vmax.f32 %v1838_v55, 0.0 }
 0x32f   : > { %v1307_v0 = vadd.f32 %v1306_v58, %v4783_v63  ;;  %v4215_v1 = vpop.f32.mrb[9].mxu1 }
 0x330   : > { %v1847_v1 = vmax.f32 %v1841_v52, 0.0 }
 0x331   : > { %v1312_v4 = vmax.f32 %v1307_v0, 0.0  ;;  %v1044_v5 = vpop.f32.mrb[6].mxu0 }
 0x332   : > { %v4901_v11 = vadd.f32 %v1044_v5, %v4878_v49  ;;  %v1046_v12 = vpop.f32.mrb[7].mxu0  ;;  %v1828_v5 = vsel %vm1823_vm10, %v1818_v43, %v1820_v39  ;;  %v4340_v14 = vpack.c.bf16 %v1847_v1, %v1844_v2 }
 0x333   : > { %v4909_v17 = vadd.f32 %v1046_v12, %v4878_v49  ;;  %4217 = vmatpush3.msk.msra.mxu1 %vm616_vm6, %v1312_v4  ;;  %v1824_v12 = vsel %vm1823_vm10, %v1808_v45, %v1810_v38  ;;  %v1840_v13 = vsub.f32 %v4615_v41, %v1828_v5  ;;  %v2154_v45 = vpop.permute.xlu1 %2153 }
 0x334   : > { %v3527_v19 = vmax.f32 %v4898_v10, %v4901_v11  ;;  %4219 = vmatmul.mubr.msk.f32.vlgmr.msra.gmra.mrb[10].mxu1 %vm612_vm7, %v4801_v32  ;;  %4329 = vmatprep.subr.bf16.mxu1 %v4479_v6 }
 0x335   : > { %v3528_v20 = vmax.f32 %v4906_v16, %v4909_v17  ;;  %v1235_v21 = vpop.f32.mrb[8].mxu0  ;;  %4332 = vmatpush3.bf16.msk.msra.mxu1 %vm4640_vm3, %v4330_v15  ;;  %4225 = vmatprep.mubr.msk.f32.mxu1 %vm4480_vm0, %v4481_v7 }
 0x336   : > { %v1236_v22 = vadd.f32 %v1235_v21, %v4783_v63  ;;  %v1237_v23 = vpop.f32.mrb[9].mxu0  ;;  %4228 = vmatprep.subr.mxu1 %v4481_v7 }
 0x337   : > { %v1238_v27 = vadd.f32 %v1237_v23, %v4783_v63  ;;  %v1836_v23 = vsub.f32 %v4597_v29, %v1824_v12  ;;  %v2162_v47 = vpop.permute.xlu1 %2161 }
 0x338   : > { %4226 = vmatmul.mubr.msk.f32.vlgmr.msra.gmra.mrb[12].mxu1 %vm453_vm4, %v4655_v62  ;;  %v1310_v34 = vmax.f32 %v1236_v22, 0.0  ;;  %v1839_v22 = vsub.f32 %v4613_v40, %v1827_v8 }
 0x339   : > { %v1311_v33 = vmax.f32 %v1238_v27, 0.0  ;;  %4230 = vmatprep.mubr.msk.f32.mxu1 %vm4480_vm0, %v4481_v7 }
 0x33b   : > { %4071 = vmatprep.subr.msk.mxu0 %vm616_vm6, %v1311_v33  ;;  %v2152_v50 = vpop.permute.xlu1 %2151 }
 0x33c   : > { %4072 = vmatpush1.msk.msra.mxu0 %vm616_vm6, %v1310_v34  ;;  %v1846_v34 = vmax.f32 %v1840_v13, 0.0  ;;  %v2172_v13 = vsel %vm2167_vm11, %v2162_v47, %v2164_v46 }
 0x33d   : > { %4073 = vmatmul.mubr.msk.f32.vlgmr.msra.gmra.mrb[10].mxu0 %vm612_vm7, %v4801_v32  ;;  %4325 = vmatprep.subr.msk.bf16.mxu0 %vm4640_vm3, %v4323_v35  ;;  %v1845_v35 = vmax.f32 %v1839_v22, 0.0  ;;  %v2171_v22 = vsel %vm2167_vm11, %v2160_v48, %v2162_v47 }
 0x33e   : > { %4328 = vmatpush1.bf16.msk.msra.mxu0 %vm4640_vm3, %v4326_v36  ;;  %1577 = vmatprep.mubr.f32.mxu0 %v4481_v7  ;;  %v1842_v36 = vmax.f32 %v1836_v23, 0.0  ;;  %v2168_v23 = vsel %vm2167_vm11, %v2152_v50, %v2154_v45 }
 0x33f   : > { %v2158_v52 = vpop.permute.xlu1 %2157 }
 0x340   : > { %v4336_v43 = vpack.c.bf16 %v1845_v35, %v1842_v36  ;;  %v2183_v35 = vsub.f32 %v4613_v40, %v2171_v22  ;;  %v2180_v36 = vsub.f32 %v4597_v29, %v2168_v23 }
 0x341   : > { %4078 = vmatmul.mubr.msk.f32.vlgmr.msra.gmra.mrb[12].mxu0 %vm453_vm4, %v4655_v62 }
 0x342   : > { %1730 = vmatprep.mubr.f32.mxu0 %v4481_v7  ;;  %v2189_v47 = vmax.f32 %v2183_v35, 0.0  ;;  %v2186_v48 = vmax.f32 %v2180_v36, 0.0 }
 0x407   : > { %v1459_v51 = vpop.f32.mrb[10].mxu1 }
 0x408   : > { %v4950_v58 = vadd.f32 %v1459_v51, %v4878_v49  ;;  %v4220_v60 = vpop.f32.mrb[11].mxu1  ;;  %v2166_v51 = vpop.permute.xlu0 %2165 }
 0x409   : > { %v2173_v55 = vsel %vm2167_vm11, %v2164_v46, %v2166_v51  ;;  %v2170_v60 = vsel %vm2167_vm11, %v2156_v44, %v2158_v52 }
 0x40a   : > { %v4956_v61 = vmax.f32 %v3529_v57, %v4950_v58  ;;  %v1825_v57 = vsel %vm1823_vm10, %v1810_v38, %v1812_v37  ;;  %v2185_v1 = vsub.f32 %v4617_v42, %v2173_v55  ;;  %v2182_v2 = vsub.f32 %v4592_v25, %v2170_v60 }
 0x40b   : > { %v1650_v0 = vpop.f32.mrb[12].mxu1  ;;  %v1837_v27 = vsub.f32 %v4590_v24, %v1825_v57  ;;  %v4346_v60 = vpack.c.bf16 %v2189_v47, %v2186_v48 }
 0x40c   : > { %v1651_v3 = vadd.f32 %v1650_v0, %v4783_v63  ;;  %v4227_v59 = vpop.f32.mrb[13].mxu1  ;;  %v2191_v8 = vmax.f32 %v2185_v1, 0.0  ;;  %v2188_v12 = vmax.f32 %v2182_v2, 0.0  ;;  %v2498_v1 = vpop.permute.xlu1 %2497 }
 0x40d   : > { %v1843_v37 = vmax.f32 %v1837_v27, 0.0 }
 0x40e   : > { %v1656_v4 = vmax.f32 %v1651_v3, 0.0 }
 0x410   : > { %v1388_v15 = vpop.f32.mrb[10].mxu0  ;;  %4229 = vmatpush3.msk.msra.mxu1 %vm616_vm6, %v1656_v4 }
 0x411   : > { %v4965_v18 = vadd.f32 %v1388_v15, %v4878_v49  ;;  %v1390_v9 = vpop.f32.mrb[11].mxu0  ;;  %4231 = vmatmul.mubr.msk.f32.vlgmr.msra.gmra.mrb[14].mxu1 %vm612_vm7, %v4801_v32  ;;  %4339 = vmatprep.subr.bf16.mxu1 %v4479_v6 }
 0x412   : > { %v4972_v21 = vadd.f32 %v1390_v9, %v4878_v49  ;;  %4342 = vmatpush3.bf16.msk.msra.mxu1 %vm4640_vm3, %v4340_v14  ;;  %4237 = vmatprep.mubr.msk.f32.mxu1 %vm4480_vm0, %v4481_v7  ;;  %v4350_v9 = vpack.c.bf16 %v2191_v8, %v2188_v12 }
 0x413   : > { %v4984_v26 = vmax.f32 %v3527_v19, %v4965_v18  ;;  %4240 = vmatprep.subr.mxu1 %v4481_v7 }
 0x414   : > { %v4992_v28 = vmax.f32 %v3528_v20, %v4972_v21  ;;  %v1579_v30 = vpop.f32.mrb[12].mxu0  ;;  %v4333_v20 = vpack.c.bf16 %v1846_v34, %v1843_v37  ;;  %v2184_v34 = vsub.f32 %v4615_v41, %v2172_v13 }
 0x415   : > { %v1580_v31 = vadd.f32 %v1579_v30, %v4783_v63  ;;  %v1581_v33 = vpop.f32.mrb[13].mxu0  ;;  %4238 = vmatmul.mubr.msk.f32.vlgmr.msra.gmra.mrb[16].mxu1 %vm453_vm4, %v4655_v62  ;;  %v2169_v30 = vsel %vm2167_vm11, %v2154_v45, %v2156_v44 }
 0x416   : > { %v1582_v19 = vadd.f32 %v1581_v33, %v4783_v63  ;;  %4242 = vmatprep.mubr.msk.f32.mxu1 %vm4480_vm0, %v4481_v7  ;;  %v2190_v45 = vmax.f32 %v2184_v34, 0.0 }
 0x417   : > { %v1654_v39 = vmax.f32 %v1580_v31, 0.0 }
 0x418   : > { %v1655_v38 = vmax.f32 %v1582_v19, 0.0 }
 0x41a   : > { %4081 = vmatprep.subr.msk.mxu0 %vm616_vm6, %v1655_v38  ;;  %v2181_v38 = vsub.f32 %v4590_v24, %v2169_v30 }
 0x41b   : > { %4082 = vmatpush1.msk.msra.mxu0 %vm616_vm6, %v1654_v39 }
 0x41c   : > { %4083 = vmatmul.mubr.msk.f32.vlgmr.msra.gmra.mrb[14].mxu0 %vm612_vm7, %v4801_v32  ;;  %4335 = vmatprep.subr.msk.bf16.mxu0 %vm4640_vm3, %v4333_v20  ;;  %v2187_v50 = vmax.f32 %v2181_v38, 0.0 }
 0x41d   : > { %4338 = vmatpush1.bf16.msk.msra.mxu0 %vm4640_vm3, %v4336_v43  ;;  %1921 = vmatprep.mubr.f32.mxu0 %v4481_v7 }
 0x41e   : > { %v4343_v55 = vpack.c.bf16 %v2190_v45, %v2187_v50 }
 0x420   : > { %4088 = vmatmul.mubr.msk.f32.vlgmr.msra.gmra.mrb[16].mxu0 %vm453_vm4, %v4655_v62 }
 0x421   : > { %2074 = vmatprep.mubr.f32.mxu0 %v4481_v7 }
 0x4e4   : > { %v1803_v0 = vpop.f32.mrb[14].mxu1 }
 0x4e5   : > { %v5017_v3 = vadd.f32 %v1803_v0, %v4878_v49  ;;  %v4232_v59 = vpop.f32.mrb[15].mxu1  ;;  %v2500_v0 = vpop.permute.xlu0 %2499 }
 0x4e6   : > { %v2506_v59 = vpop.permute.xlu1 %2505 }
 0x4e7   : > { %v3535_v4 = vmax.f32 %v4956_v61, %v5017_v3 }
 0x4e8   : > { %v1994_v5 = vpop.f32.mrb[16].mxu1 }
 0x4e9   : > { %v1995_v14 = vadd.f32 %v1994_v5, %v4783_v63  ;;  %v4239_v15 = vpop.f32.mrb[17].mxu1  ;;  %v2508_v2 = vpop.permute.xlu0 %2507 }
 0x4ea   : > { %v2496_v8 = vpop.permute.xlu1 %2495  ;;  %v2516_v61 = vsel %vm2511_vm12, %v2506_v59, %v2508_v2 }
 0x4eb   : > { %v2000_v57 = vmax.f32 %v1995_v14, 0.0  ;;  %v2528_v50 = vsub.f32 %v4615_v41, %v2516_v61 }
 0x4ed   : > { %4241 = vmatpush3.msk.msra.mxu1 %vm616_vm6, %v2000_v57  ;;  %v2504_v5 = vpop.permute.xlu0 %2503 }
 0x4ee   : > { %4243 = vmatmul.mubr.msk.f32.vlgmr.msra.gmra.mrb[18].mxu1 %vm612_vm7, %v4801_v32  ;;  %4349 = vmatprep.subr.bf16.mxu1 %v4479_v6  ;;  %v2502_v14 = vpop.permute.xlu1 %2501 }
 0x4ef   : > { %v1732_v27 = vpop.f32.mrb[14].mxu0  ;;  %4352 = vmatpush3.bf16.msk.msra.mxu1 %vm4640_vm3, %v4350_v9  ;;  %4249 = vmatprep.mubr.msk.f32.mxu1 %vm4480_vm0, %v4481_v7  ;;  %v2514_v57 = vsel %vm2511_vm12, %v2500_v0, %v2502_v14 }
 0x4f0   : > { %v5035_v31 = vadd.f32 %v1732_v27, %v4878_v49  ;;  %v1734_v33 = vpop.f32.mrb[15].mxu0  ;;  %4252 = vmatprep.subr.mxu1 %v4481_v7  ;;  %v2526_v22 = vsub.f32 %v4592_v25, %v2514_v57 }
 0x4f1   : > { %v5040_v19 = vadd.f32 %v1734_v33, %v4878_v49  ;;  %v2510_v12 = vpop.permute.xlu0 %2509 }
 0x4f2   : > { %v3533_v37 = vmax.f32 %v4984_v26, %v5035_v31  ;;  %4250 = vmatmul.mubr.msk.f32.vlgmr.msra.gmra.mrb[20].mxu1 %vm453_vm4, %v4655_v62  ;;  %v2517_v15 = vsel %vm2511_vm12, %v2508_v2, %v2510_v12  ;;  %v2532_v35 = vmax.f32 %v2526_v22, 0.0 }
 0x4f3   : > { %v3534_v39 = vmax.f32 %v4992_v28, %v5040_v19  ;;  %v1923_v20 = vpop.f32.mrb[16].mxu0  ;;  %4254 = vmatprep.mubr.msk.f32.mxu1 %vm4480_vm0, %v4481_v7  ;;  %v2529_v13 = vsub.f32 %v4617_v42, %v2517_v15 }
 0x4f4   : > { %v1924_v43 = vadd.f32 %v1923_v20, %v4783_v63  ;;  %v1925_v44 = vpop.f32.mrb[17].mxu0 }
 0x4f5   : > { %v1926_v46 = vadd.f32 %v1925_v44, %v4783_v63  ;;  %v2535_v34 = vmax.f32 %v2529_v13, 0.0  ;;  %v2512_v44 = vsel %vm2511_vm12, %v2496_v8, %v2498_v1  ;;  %v2534_v8 = vmax.f32 %v2528_v50, 0.0  ;;  %v2844_v28 = vpop.permute.xlu0 %2843 }
 0x4f6   : > { %v1998_v52 = vmax.f32 %v1924_v43, 0.0 }
 0x4f7   : > { %v1999_v51 = vmax.f32 %v1926_v46, 0.0  ;;  %v4360_v43 = vpack.c.bf16 %v2535_v34, %v2532_v35  ;;  %v2513_v46 = vsel %vm2511_vm12, %v2498_v1, %v2500_v0 }
 0x4f8   : > { %v2525_v0 = vsub.f32 %v4590_v24, %v2513_v46 }
 0x4f9   : > { %4091 = vmatprep.subr.msk.mxu0 %vm616_vm6, %v1999_v51  ;;  %v2852_v22 = vpop.permute.xlu0 %2851 }
 0x4fa   : > { %4092 = vmatpush1.msk.msra.mxu0 %vm616_vm6, %v1998_v52  ;;  %v2531_v26 = vmax.f32 %v2525_v0, 0.0 }
 0x4fb   : > { %4093 = vmatmul.mubr.msk.f32.vlgmr.msra.gmra.mrb[18].mxu0 %vm612_vm7, %v4801_v32  ;;  %4345 = vmatprep.subr.msk.bf16.mxu0 %vm4640_vm3, %v4343_v55  ;;  %v2524_v55 = vsub.f32 %v4597_v29, %v2512_v44 }
 0x4fc   : > { %4348 = vmatpush1.bf16.msk.msra.mxu0 %vm4640_vm3, %v4346_v60  ;;  %2265 = vmatprep.mubr.f32.mxu0 %v4481_v7 }
 0x4fd   : > { %v2530_v15 = vmax.f32 %v2524_v55, 0.0 }
 0x4ff   : > { %4098 = vmatmul.mubr.msk.f32.vlgmr.msra.gmra.mrb[20].mxu0 %vm453_vm4, %v4655_v62 }
 0x500   : > { %2418 = vmatprep.mubr.f32.mxu0 %v4481_v7 }
 0x5c1   : > { %v2147_v9 = vpop.f32.mrb[18].mxu1 }
 0x5c2   : > { %v5072_v23 = vadd.f32 %v2147_v9, %v4878_v49  ;;  %v4244_v27 = vpop.f32.mrb[19].mxu1  ;;  %v4353_v9 = vpack.c.bf16 %v2534_v8, %v2531_v26 }
 0x5c4   : > { %v5078_v30 = vmax.f32 %v3535_v4, %v5072_v23  ;;  %v2515_v4 = vsel %vm2511_vm12, %v2504_v5, %v2506_v59 }
 0x5c5   : > { %v2338_v33 = vpop.f32.mrb[20].mxu1  ;;  %v2527_v52 = vsub.f32 %v4613_v40, %v2515_v4 }
 0x5c6   : > { %v2339_v36 = vadd.f32 %v2338_v33, %v4783_v63  ;;  %v4251_v38 = vpop.f32.mrb[21].mxu1  ;;  %v2848_v33 = vpop.permute.xlu0 %2847 }
 0x5c7   : > { %v2533_v14 = vmax.f32 %v2527_v52, 0.0 }
 0x5c8   : > { %v2344_v20 = vmax.f32 %v2339_v36, 0.0 }
 0x5c9   : > { %v4356_v13 = vpack.c.bf16 %v2533_v14, %v2530_v15 }
 0x5ca   : > { %4253 = vmatpush3.msk.msra.mxu1 %vm616_vm6, %v2344_v20  ;;  %v2854_v35 = vpop.permute.xlu0 %2853 }
 0x5cb   : > { %4255 = vmatmul.mubr.msk.f32.vlgmr.msra.gmra.mrb[22].mxu1 %vm612_vm7, %v4801_v32  ;;  %4359 = vmatprep.subr.bf16.mxu1 %v4479_v6  ;;  %v2861_v38 = vsel %vm2855_vm13, %v2852_v22, %v2854_v35 }
 0x5cc   : > { %4362 = vmatpush3.bf16.msk.msra.mxu1 %vm4640_vm3, %v4360_v43  ;;  %4261 = vmatprep.mubr.msk.f32.mxu1 %vm4480_vm0, %v4481_v7  ;;  %v2873_v61 = vsub.f32 %v4617_v42, %v2861_v38 }
 0x5cd   : > { %4264 = vmatprep.subr.mxu1 %v4481_v7 }
 0x5ce   : > { %v2076_v45 = vpop.f32.mrb[18].mxu0  ;;  %v2879_v50 = vmax.f32 %v2873_v61, 0.0 }
 0x5cf   : > { %v5095_v47 = vadd.f32 %v2076_v45, %v4878_v49  ;;  %v2078_v48 = vpop.f32.mrb[19].mxu0  ;;  %4262 = vmatmul.mubr.msk.f32.vlgmr.msra.gmra.mrb[24].mxu1 %vm453_vm4, %v4655_v62 }
 0x5d0   : > { %v5101_v51 = vadd.f32 %v2078_v48, %v4878_v49  ;;  %4266 = vmatprep.mubr.msk.f32.mxu1 %vm4480_vm0, %v4481_v7 }
 0x5d1   : > { %v5111_v60 = vmax.f32 %v3533_v37, %v5095_v47 }
 0x5d2   : > { %v5118_v1 = vmax.f32 %v3534_v39, %v5101_v51  ;;  %v2267_v2 = vpop.f32.mrb[20].mxu0  ;;  %v2842_v39 = vpop.permute.xlu1 %2841 }
 0x5d3   : > { %v2268_v59 = vadd.f32 %v2267_v2, %v4783_v63  ;;  %v2269_v5 = vpop.f32.mrb[21].mxu0  ;;  %v2857_v15 = vsel %vm2855_vm13, %v2842_v39, %v2844_v28 }
 0x5d4   : > { %v2270_v12 = vadd.f32 %v2269_v5, %v4783_v63 }
 0x5d5   : > { %v2342_v57 = vmax.f32 %v2268_v59, 0.0 }
 0x5d6   : > { %v2343_v37 = vmax.f32 %v2270_v12, 0.0  ;;  %v2850_v27 = vpop.permute.xlu1 %2849 }
 0x5d7   : > { %v2860_v5 = vsel %vm2855_vm13, %v2850_v27, %v2852_v22  ;;  %v2859_v8 = vsel %vm2855_vm13, %v2848_v33, %v2850_v27  ;;  %v2869_v27 = vsub.f32 %v4590_v24, %v2857_v15 }
 0x5d8   : > { %4101 = vmatprep.subr.msk.mxu0 %vm616_vm6, %v2343_v37 }
 0x5d9   : > { %4102 = vmatpush1.msk.msra.mxu0 %vm616_vm6, %v2342_v57  ;;  %v2872_v57 = vsub.f32 %v4615_v41, %v2860_v5 }
 0x5da   : > { %4103 = vmatmul.mubr.msk.f32.vlgmr.msra.gmra.mrb[22].mxu0 %vm612_vm7, %v4801_v32  ;;  %4355 = vmatprep.subr.msk.bf16.mxu0 %vm4640_vm3, %v4353_v9  ;;  %v2840_v34 = vpop.permute.xlu1 %2839 }
 0x5db   : > { %4358 = vmatpush1.bf16.msk.msra.mxu0 %vm4640_vm3, %v4356_v13  ;;  %2609 = vmatprep.mubr.f32.mxu0 %v4481_v7  ;;  %v2856_v12 = vsel %vm2855_vm13, %v2840_v34, %v2842_v39  ;;  %v2878_v35 = vmax.f32 %v2872_v57, 0.0 }
 0x5dc   : > { %v2868_v13 = vsub.f32 %v4597_v29, %v2856_v12 }
 0x5de   : > { %4108 = vmatmul.mubr.msk.f32.vlgmr.msra.gmra.mrb[24].mxu0 %vm453_vm4, %v4655_v62  ;;  %v2846_v36 = vpop.permute.xlu1 %2845 }
 0x5df   : > { %2762 = vmatprep.mubr.f32.mxu0 %v4481_v7  ;;  %v2858_v20 = vsel %vm2855_vm13, %v2844_v28, %v2846_v36 }
 0x5e0   : > { %v2870_v4 = vsub.f32 %v4592_v25, %v2858_v20  ;;  %v2874_v20 = vmax.f32 %v2868_v13, 0.0 }
 0x5e2   : > { %v2876_v52 = vmax.f32 %v2870_v4, 0.0 }
 0x5e4   : > { %v4370_v59 = vpack.c.bf16 %v2879_v50, %v2876_v52  ;;  %v5189_v50 = vld [vmem:[%s5564_s3] sm:$0xf]  ;;  %v3188_v52 = vpop.permute.xlu0 %3187 }
 0x69e   : > { %v2491_v43 = vpop.f32.mrb[22].mxu1 }
 0x69f   : > { %v5139_v44 = vadd.f32 %v2491_v43, %v4878_v49  ;;  %v4256_v45 = vpop.f32.mrb[23].mxu1  ;;  %v2875_v43 = vmax.f32 %v2869_v27, 0.0 }
 0x6a1   : > { %v3541_v46 = vmax.f32 %v5078_v30, %v5139_v44  ;;  %v4363_v45 = vpack.c.bf16 %v2878_v35, %v2875_v43 }
 0x6a2   : > { %v2682_v48 = vpop.f32.mrb[24].mxu1 }
 0x6a3   : > { %v2683_v55 = vadd.f32 %v2682_v48, %v4783_v63  ;;  %v4263_v0 = vpop.f32.mrb[25].mxu1 }
 0x6a4   : > { %v3196_v0 = vpop.permute.xlu0 %3195 }
 0x6a5   : > { %v2688_v2 = vmax.f32 %v2683_v55, 0.0  ;;  %v3186_v55 = vpop.permute.xlu1 %3185 }
 0x6a6   : > { %v3201_v43 = vsel %vm3199_vm14, %v3186_v55, %v3188_v52 }
 0x6a7   : > { %4265 = vmatpush3.msk.msra.mxu1 %vm616_vm6, %v2688_v2 }
 0x6a8   : > { %4267 = vmatmul.mubr.msk.f32.vlgmr.msra.gmra.mrb[26].mxu1 %vm612_vm7, %v4801_v32  ;;  %4369 = vmatprep.subr.bf16.mxu1 %v4479_v6 }
 0x6a9   : > { %4372 = vmatpush3.bf16.msk.msra.mxu1 %vm4640_vm3, %v4370_v59  ;;  %4273 = vmatprep.mubr.msk.f32.mxu1 %vm4480_vm0, %v4481_v7  ;;  %v3194_v2 = vpop.permute.xlu1 %3193  ;;  %v3192_v59 = vpop.permute.xlu0 %3191 }
 0x6aa   : > { %4276 = vmatprep.subr.mxu1 %v4481_v7  ;;  %v3203_v30 = vsel %vm3199_vm14, %v3192_v59, %v3194_v2 }
 0x6ac   : > { %4274 = vmatmul.mubr.msk.f32.vlgmr.msra.gmra.mrb[28].mxu1 %vm453_vm4, %v4655_v62  ;;  %v2871_v62 = vsub.f32 %v4613_v40, %v2859_v8 }
 0x6ad   : > { %v2420_v14 = vpop.f32.mrb[22].mxu0  ;;  %4278 = vmatprep.mubr.msk.f32.mxu1 %vm4480_vm0, %v4481_v7  ;;  %v3184_v5 = vpop.permute.xlu1 %3183 }
 0x6ae   : > { %v5162_v26 = vadd.f32 %v2420_v14, %v4878_v49  ;;  %v2422_v37 = vpop.f32.mrb[23].mxu0  ;;  %v2877_v38 = vmax.f32 %v2871_v62, 0.0  ;;  %v3198_v8 = vpop.permute.xlu0 %3197 }
 0x6af   : > { %v5166_v9 = vadd.f32 %v2422_v37, %v4878_v49  ;;  %v3205_v14 = vsel %vm3199_vm14, %v3196_v0, %v3198_v8  ;;  %v3215_v8 = vsub.f32 %v4613_v40, %v3203_v30 }
 0x6b0   : > { %v3539_v22 = vmax.f32 %v5111_v60, %v5162_v26  ;;  %v4366_v48 = vpack.c.bf16 %v2877_v38, %v2874_v20  ;;  %v3217_v57 = vsub.f32 %v4617_v42, %v3205_v14 }
 0x6b1   : > { %v3540_v28 = vmax.f32 %v5118_v1, %v5166_v9  ;;  %v2611_v39 = vpop.f32.mrb[24].mxu0  ;;  %v3190_v12 = vpop.permute.xlu1 %3189  ;;  %v5265_v1 = vld [vmem:[%s368_s28 + $0x8] sm:$0xff] }
 0x6b2   : > { %v2612_v33 = vadd.f32 %v2611_v39, %v4783_v63  ;;  %v2613_v34 = vpop.f32.mrb[25].mxu0  ;;  %v3202_v15 = vsel %vm3199_vm14, %v3188_v52, %v3190_v12  ;;  %v3213_v52 = vsub.f32 %v4590_v24, %v3201_v43  ;;  %v3221_v12 = vmax.f32 %v3215_v8, 0.0  ;;  %5581 = vst [vmem:[#allocation3_spill] sm:$0xff] %v5265_v1  ;;  %3696 = vrot.lane.b32.xlu0 %v5265_v1, %s4482_s30 }
 0x6b3   : > { %v2614_v36 = vadd.f32 %v2613_v34, %v4783_v63  ;;  %v3214_v62 = vsub.f32 %v4592_v25, %v3202_v15  ;;  %v3223_v34 = vmax.f32 %v3217_v57, 0.0  ;;  %v3204_v25 = vsel %vm3199_vm14, %v3194_v2, %v3196_v0 }
 0x6b4   : > { %v2686_v4 = vmax.f32 %v2612_v33, 0.0 }
 0x6b5   : > { %v2687_v61 = vmax.f32 %v2614_v36, 0.0  ;;  %v3220_v35 = vmax.f32 %v3214_v62, 0.0 }
 0x6b6   : > { %3700 = vrot.lane.b32.xlu0 %v3662_v56, %s4482_s30 }
 0x6b7   : > { %4111 = vmatprep.subr.msk.mxu0 %vm616_vm6, %v2687_v61  ;;  %v4380_v42 = vpack.c.bf16 %v3223_v34, %v3220_v35 }
 0x6b8   : > { %4112 = vmatpush1.msk.msra.mxu0 %vm616_vm6, %v2686_v4 }
 0x6b9   : > { %4113 = vmatmul.mubr.msk.f32.vlgmr.msra.gmra.mrb[26].mxu0 %vm612_vm7, %v4801_v32  ;;  %4365 = vmatprep.subr.msk.bf16.mxu0 %vm4640_vm3, %v4363_v45  ;;  %v3216_v45 = vsub.f32 %v4615_v41, %v3204_v25 }
 0x6ba   : > { %4368 = vmatpush1.bf16.msk.msra.mxu0 %vm4640_vm3, %v4366_v48  ;;  %2953 = vmatprep.mubr.f32.mxu0 %v4481_v7 }
 0x6bb   : > { %3728 = vrot.lane.b32.xlu0 %v5265_v1, %s4484_s14 }
 0x6bd   : > { %4118 = vmatmul.mubr.msk.f32.vlgmr.msra.gmra.mrb[28].mxu0 %vm453_vm4, %v5189_v50 }
 0x6be   : > { %3106 = vmatprep.mubr.f32.mxu0 %v4481_v7 }
 0x6bf   : > { %3732 = vrot.lane.b32.xlu0 %v3662_v56, %s4484_s14 }
 0x6c3   : > { %3760 = vrot.lane.b32.xlu0 %v5265_v1, %s4485_s8 }
 0x6c7   : > { %3764 = vrot.lane.b32.xlu0 %v3662_v56, %s4485_s8 }
 0x6cb   : > { %3792 = vrot.lane.b32.xlu0 %v5265_v1, %s4486_s15 }
 0x6cf   : > { %3796 = vrot.lane.b32.xlu0 %v3662_v56, %s4486_s15 }
 0x6d3   : > { %3824 = vrot.lane.b32.xlu0 %v5265_v1, %s4487_s16 }
 0x6d7   : > { %3828 = vrot.lane.b32.xlu0 %v3662_v56, %s4487_s16 }
 0x6db   : > { %3856 = vrot.lane.b32.xlu0 %v5265_v1, %s4488_s17 }
 0x6df   : > { %3860 = vrot.lane.b32.xlu0 %v3662_v56, %s4488_s17 }
 0x6e3   : > { %3888 = vrot.lane.b32.xlu0 %v5265_v1, %s4489_s18 }
 0x6e7   : > { %3892 = vrot.lane.b32.xlu0 %v3662_v56, %s4489_s18 }
 0x6eb   : > { %3920 = vrot.lane.b32.xlu0 %v5265_v1, %s4490_s19 }
 0x6ef   : > { %3924 = vrot.lane.b32.xlu0 %v3662_v56, %s4490_s19 }
 0x724   : > { %v3697_v25 = vpop.permute.xlu0 %3696 }
 0x77b   : > { %v2835_v37 = vpop.f32.mrb[26].mxu1 }
 0x77c   : > { %v5199_v13 = vadd.f32 %v2835_v37, %v4878_v49  ;;  %v4268_v27 = vpop.f32.mrb[27].mxu1 }
 0x77e   : > { %v5205_v39 = vmax.f32 %v3541_v46, %v5199_v13 }
 0x77f   : > { %v3026_v33 = vpop.f32.mrb[28].mxu1 }
 0x780   : > { %v3027_v36 = vadd.f32 %v3026_v33, %v4783_v63  ;;  %v4275_v38 = vpop.f32.mrb[29].mxu1 }
 0x782   : > { %v3032_v20 = vmax.f32 %v3027_v36, 0.0  ;;  %v4469_v36 = vld [vmem:[%s5565_s4] sm:$0x1] }
 0x784   : > { %4277 = vmatpush3.msk.msra.mxu1 %vm616_vm6, %v3032_v20 }
 0x785   : > { %4279 = vmatmul.mubr.msk.f32.vlgmr.msra.gmra.mrb[30].mxu1 %vm612_vm7, %v4801_v32  ;;  %4379 = vmatprep.subr.bf16.mxu1 %v4479_v6  ;;  %v3200_v6 = vsel %vm3199_vm14, %v3184_v5, %v3186_v55  ;;  %v3222_v5 = vmax.f32 %v3216_v45, 0.0 }
 0x786   : > { %4382 = vmatpush3.bf16.msk.msra.mxu1 %vm4640_vm3, %v4380_v42  ;;  %4285 = vmatprep.mubr.msk.f32.mxu1 %vm4480_vm0, %v4481_v7  ;;  %v3212_v0 = vsub.f32 %v4597_v29, %v3200_v6 }
 0x787   : > { %4288 = vmatprep.subr.mxu1 %v4481_v7 }
 0x788   : > { %v3218_v60 = vmax.f32 %v3212_v0, 0.0 }
 0x789   : > { %4286 = vmatmul.mubr.msk.f32.vlgmr.msra.gmra.mrb[32].mxu1 %vm453_vm4, %v5189_v50 }
 0x78a   : > { %4290 = vmatprep.mubr.msk.f32.mxu1 %vm4480_vm0, %v4481_v7  ;;  %v4376_v37 = vpack.c.bf16 %v3221_v12, %v3218_v60 }
 0x78c   : > { %v2764_v46 = vpop.f32.mrb[26].mxu0 }
 0x78d   : > { %v5226_v61 = vadd.f32 %v2764_v46, %v4878_v49  ;;  %v2766_v4 = vpop.f32.mrb[27].mxu0 }
 0x78e   : > { %v5230_v48 = vadd.f32 %v2766_v4, %v4878_v49 }
 0x78f   : > { %v5238_v2 = vmax.f32 %v3539_v22, %v5226_v61  ;;  %v3219_v22 = vmax.f32 %v3213_v52, 0.0 }
 0x790   : > { %v5245_v41 = vmax.f32 %v3540_v28, %v5230_v48  ;;  %v2955_v55 = vpop.f32.mrb[28].mxu0  ;;  %v5273_v28 = vld [vmem:[%s368_s28 + $0x10] sm:$0xff] }
 0x791   : > { %v2956_v59 = vadd.f32 %v2955_v55, %v4783_v63  ;;  %v2957_v40 = vpop.f32.mrb[29].mxu0  ;;  %v4373_v24 = vpack.c.bf16 %v3222_v5, %v3219_v22 }
 0x792   : > { %v2958_v29 = vadd.f32 %v2957_v40, %v4783_v63  ;;  %v5359_v40 = vpop.permute.xlu0 %3700 }
 0x793   : > { %v3030_v15 = vmax.f32 %v2956_v59, 0.0 }
 0x794   : > { %v3031_v14 = vmax.f32 %v2958_v29, 0.0 }
 0x796   : > { %4121 = vmatprep.subr.msk.mxu0 %vm616_vm6, %v3031_v14  ;;  %v5366_v12 = vpop.permute.xlu0 %3728 }
 0x797   : > { %4122 = vmatpush1.msk.msra.mxu0 %vm616_vm6, %v3030_v15 }
 0x798   : > { %4123 = vmatmul.mubr.msk.f32.vlgmr.msra.gmra.mrb[30].mxu0 %vm612_vm7, %v4801_v32  ;;  %4375 = vmatprep.subr.msk.bf16.mxu0 %vm4640_vm3, %v4373_v24  ;;  %v5267_v32 = vld [vmem:[%s368_s28] sm:$0xff] }
 0x799   : > { %4378 = vmatpush1.bf16.msk.msra.mxu0 %vm4640_vm3, %v4376_v37  ;;  %3297 = vmatprep.mubr.f32.mxu0 %v4481_v7  ;;  %5582 = vst [vmem:[#allocation4_spill] sm:$0xff] %v5267_v32 }
 0x79a   : > { %3694 = vrot.lane.b32.xlu1 %v5267_v32, %s4482_s30  ;;  %v3733_v22 = vpop.permute.xlu0 %3732 }
 0x79c   : > { %4128 = vmatmul.mubr.msk.f32.vlgmr.msra.gmra.mrb[32].mxu0 %vm453_vm4, %v5189_v50 }
 0x79d   : > { %3450 = vmatprep.mubr.f32.mxu0 %v4481_v7 }
 0x79e   : > { %3698 = vrot.lane.b32.xlu1 %v5273_v28, %s4482_s30  ;;  %v5372_v14 = vpop.permute.xlu0 %3760 }
 0x7a2   : > { %3726 = vrot.lane.b32.xlu1 %v5267_v32, %s4484_s14  ;;  %v3765_v24 = vpop.permute.xlu0 %3764 }
 0x7a6   : > { %3730 = vrot.lane.b32.xlu1 %v5273_v28, %s4484_s14  ;;  %v5378_v56 = vpop.permute.xlu0 %3792  ;;  %s5513_s14 = scalar_lea.vmem %s5570_s9, %s4384_s10 }
 0x7aa   : > { %3758 = vrot.lane.b32.xlu1 %v5267_v32, %s4485_s8 }
 0x7ae   : > { %3762 = vrot.lane.b32.xlu1 %v5273_v28, %s4485_s8 }
 0x7b2   : > { %3790 = vrot.lane.b32.xlu1 %v5267_v32, %s4486_s15 }
 0x7b6   : > { %3794 = vrot.lane.b32.xlu1 %v5273_v28, %s4486_s15 }
 0x7ba   : > { %3822 = vrot.lane.b32.xlu1 %v5267_v32, %s4487_s16 }
 0x7be   : > { %3826 = vrot.lane.b32.xlu1 %v5273_v28, %s4487_s16 }
 0x7c2   : > { %3854 = vrot.lane.b32.xlu1 %v5267_v32, %s4488_s17 }
 0x7c6   : > { %3858 = vrot.lane.b32.xlu1 %v5273_v28, %s4488_s17 }
 0x7ca   : > { %3886 = vrot.lane.b32.xlu1 %v5267_v32, %s4489_s18 }
 0x7ce   : > { %3890 = vrot.lane.b32.xlu1 %v5273_v28, %s4489_s18 }
 0x7d2   : > { %3918 = vrot.lane.b32.xlu1 %v5267_v32, %s4490_s19 }
 0x7d6   : > { %3922 = vrot.lane.b32.xlu1 %v5273_v28, %s4490_s19 }
 0x80c   : > { %v3695_v30 = vpop.permute.xlu1 %3694 }
 0x80d   : > { %v5347_v46 = vsel %vm791_vm5, %v3695_v30, %v3697_v25 }
 0x80e   : > { %5583 = vst [vmem:[#allocation5_spill] sm:$0xff] %v5347_v46 }
 0x810   : > { %v5353_v52 = vpop.permute.xlu1 %3698 }
 0x811   : > { %v5357_v55 = vsel %vm791_vm5, %v3697_v25, %v5353_v52 }
 0x812   : > { %5584 = vst [vmem:[#allocation6_spill] sm:$0xff] %v5357_v55 }
 0x814   : > { %v5362_v29 = vpop.permute.xlu1 %3726 }
 0x858   : > { %v3179_v7 = vpop.f32.mrb[30].mxu1 }
 0x859   : > { %v5328_v50 = vadd.f32 %v3179_v7, %v4878_v49  ;;  %v4280_v57 = vpop.f32.mrb[31].mxu1 }
 0x85a   : > { %v3797_v57 = vpop.permute.xlu0 %3796 }
 0x85b   : > { %v3547_v62 = vmax.f32 %v5205_v39, %v5328_v50 }
 0x85c   : > { %v3370_v27 = vpop.f32.mrb[32].mxu1 }
 0x85d   : > { %v3371_v33 = vadd.f32 %v3370_v27, %v4783_v63  ;;  %v4287_v34 = vpop.f32.mrb[33].mxu1 }
 0x85f   : > { %v3376_v35 = vmax.f32 %v3371_v33, 0.0  ;;  %v5384_v33 = vpop.permute.xlu0 %3824 }
 0x861   : > { %4289 = vmatpush3.msk.msra.mxu1 %vm616_vm6, %v3376_v35 }
 0x862   : > { %4291 = vmatmul.mubr.msk.f32.vlgmr.msra.gmra.mrb[34].mxu1 %vm612_vm7, %v4469_v36 }
 0x863   : > { %v3829_v35 = vpop.permute.xlu0 %3828 }
 0x86b   : > { %v3108_v38 = vpop.f32.mrb[30].mxu0 }
 0x86c   : > { %v5339_v20 = vadd.f32 %v3108_v38, %v4878_v49  ;;  %v3110_v42 = vpop.f32.mrb[31].mxu0  ;;  %v5390_v38 = vpop.permute.xlu0 %3856 }
 0x86d   : > { %v5342_v39 = vadd.f32 %v3110_v42, %v4878_v49  ;;  %5587 = vst [vmem:[#allocation9_spill] sm:$0xff] %v5390_v38 }
 0x86f   : > { %v3299_v4 = vpop.f32.mrb[32].mxu0 }
 0x870   : > { %v3300_v45 = vadd.f32 %v3299_v4, %v4783_v63  ;;  %v3301_v8 = vpop.f32.mrb[33].mxu0  ;;  %v3861_v25 = vpop.permute.xlu0 %3860 }
 0x871   : > { %v3302_v0 = vadd.f32 %v3301_v8, %v4783_v63  ;;  %v3731_v63 = vpop.permute.xlu1 %3730 }
 0x872   : > { %v3374_v5 = vmax.f32 %v3300_v45, 0.0  ;;  %v5370_v60 = vsel %vm1135_vm8, %v5366_v12, %v3731_v63 }
 0x873   : > { %v3375_v59 = vmax.f32 %v3302_v0, 0.0  ;;  %5585 = vst [vmem:[#allocation7_spill] sm:$0xff] %v5370_v60 }
 0x874   : > { %v5397_v0 = vpop.permute.xlu0 %3888 }
 0x875   : > { %4131 = vmatprep.subr.msk.mxu0 %vm616_vm6, %v3375_v59  ;;  %v5374_v15 = vpop.permute.xlu1 %3758  ;;  %5590 = vst [vmem:[#allocation12_spill] sm:$0xff] %v5397_v0 }
 0x876   : > { %4132 = vmatpush1.msk.msra.mxu0 %vm616_vm6, %v3374_v5 }
 0x877   : > { %4133 = vmatmul.mubr.msk.f32.vlgmr.msra.gmra.mrb[34].mxu0 %vm612_vm7, %v4469_v36 }
 0x878   : > { %v3893_v32 = vpop.permute.xlu0 %3892 }
 0x879   : > { %v5376_v37 = vpop.permute.xlu1 %3762 }
 0x87d   : > { %v5380_v7 = vpop.permute.xlu1 %3790 }
 0x881   : > { %v5382_v27 = vpop.permute.xlu1 %3794 }
 0x885   : > { %v5386_v34 = vpop.permute.xlu1 %3822 }
 0x889   : > { %v5388_v36 = vpop.permute.xlu1 %3826 }
 0x88a   : > { %5586 = vst [vmem:[#allocation8_spill] sm:$0xff] %v5388_v36 }
 0x88d   : > { %v5392_v42 = vpop.permute.xlu1 %3854 }
 0x88e   : > { %5588 = vst [vmem:[#allocation10_spill] sm:$0xff] %v5392_v42 }
 0x891   : > { %v5394_v30 = vpop.permute.xlu1 %3858 }
 0x892   : > { %5589 = vst [vmem:[#allocation11_spill] sm:$0xff] %v5394_v30 }
 0x895   : > { %v5399_v59 = vpop.permute.xlu1 %3886 }
 0x896   : > { %5591 = vst [vmem:[#allocation13_spill] sm:$0xff] %v5399_v59 }
 0x935   : > { %v3523_v4 = vpop.f32.mrb[34].mxu1 }
 0x936   : > { %v3524_v45 = vadd.f32 %v3523_v4, %v4878_v49  ;;  %v4292_v8 = vpop.f32.mrb[35].mxu1 }
 0x938   : > { %v3550_v5 = vmax.f32 %v3547_v62, %v3524_v45 }
 0x93a   : > { %v3553_v43 = vsub.f32 %v4884_v53, %v3550_v5  ;;  %v3562_v6 = vsub.f32 %v4887_v54, %v3550_v5  ;;  %v3571_v60 = vsub.f32 %v4950_v58, %v3550_v5  ;;  %v3580_v55 = vsub.f32 %v5017_v3, %v3550_v5  ;;  %v5409_v54 = vpop.permute.xlu1 %3890 }
 0x93b   : > { %v3589_v1 = vsub.f32 %v5072_v23, %v3550_v5  ;;  %v3598_v42 = vsub.f32 %v5139_v44, %v3550_v5  ;;  %v3607_v4 = vsub.f32 %v5199_v13, %v3550_v5  ;;  %v3616_v8 = vsub.f32 %v5328_v50, %v3550_v5  ;;  %5592 = vst [vmem:[#allocation14_spill] sm:$0xff] %v5409_v54  ;;  %v5411_v50 = vpop.permute.xlu0 %3920 }
 0x93c   : > { %v3558_v0 = vmul.f32 1.442695, %v3553_v43  ;;  %v3567_v38 = vmul.f32 1.442695, %v3562_v6  ;;  %v3576_v59 = vmul.f32 1.442695, %v3571_v60  ;;  %v3625_v62 = vsub.f32 %v3524_v45, %v3550_v5 }
 0x93d   : > { %v3585_v46 = vmul.f32 1.442695, %v3580_v55  ;;  %v3663_v53 = vlaneseq  ;;  %v3594_v58 = vmul.f32 1.442695, %v3589_v1  ;;  %v3603_v3 = vmul.f32 1.442695, %v3598_v42 }
 0x93e   : > { %4408 = vpow2.f32 %v3558_v0  ;;  %v3612_v23 = vmul.f32 1.442695, %v3607_v4  ;;  %v3621_v44 = vmul.f32 1.442695, %v3616_v8  ;;  %v5413_v6 = vpop.permute.xlu1 %3918  ;;  %v3630_v55 = vmul.f32 1.442695, %v3625_v62 }
 0x93f   : > { %4410 = vpow2.f32 %v3567_v38  ;;  %v3664_v13 = vshrl.u32 %v3663_v53, 7  ;;  %v3704_v1 = vsel %vm791_vm5, %v5353_v52, %v5359_v40  ;;  %v3768_v42 = vsel %vm1479_vm9, %v5376_v37, %v3765_v24  ;;  %v3925_v5 = vpop.permute.xlu0 %3924 }
 0x940   : > { %4412 = vpow2.f32 %v3576_v59  ;;  %v3800_v45 = vsel %vm1823_vm10, %v5382_v27, %v3797_v57  ;;  %v3832_v0 = vsel %vm2167_vm11, %v5388_v36, %v3829_v35  ;;  %v3896_v35 = vsel %vm2855_vm13, %v5409_v54, %v3893_v32 }
 0x941   : > { %4414 = vpow2.f32 %v3585_v46  ;;  %v5415_v43 = vsub.s32 0, %v3664_v13  ;;  %v3736_v46 = vsel %vm1135_vm8, %v3731_v63, %v3733_v22  ;;  %v3864_v63 = vsel %vm2511_vm12, %v5394_v30, %v3861_v25 }
 0x942   : > { %4416 = vpow2.f32 %v3594_v58  ;;  %v5428_v4 = vpop.permute.xlu1 %3922 }
 0x943   : > { %4418 = vpow2.f32 %v3603_v3  ;;  %5593 = vst [vmem:[#allocation15_spill] sm:$0xff] %v5428_v4  ;;  %v3928_v25 = vsel %vm3199_vm14, %v5428_v4, %v3925_v5 }
 0x944   : > { %4420 = vpow2.f32 %v3612_v23 }
 0x945   : > { %4422 = vpow2.f32 %v3621_v44 }
 0x946   : > { %4424 = vpow2.f32 %v3630_v55 }
 0x948   : > { %v4409_v60 = vpop.eup %4408 }
 0x949   : > { %v4411_v38 = vpop.eup %4410  ;;  %v3674_v59 = vrot.slane %v4409_v60, %v5415_v43 }
 0x94a   : > { %v4413_v8 = vpop.eup %4412  ;;  %v3634_v52 = vadd.f32 %v4411_v38, %v4409_v60  ;;  %v3689_v40 = vrot.slane %v4411_v38, %v5415_v43  ;;  %v3452_v22 = vpop.f32.mrb[34].mxu0  ;;  %v5594_v38 = vmax.f32 %v5238_v2, %v5339_v20 }
 0x94b   : > { %v4415_v24 = vpop.eup %4414  ;;  %v3677_v57 = vmul.f32 %v3674_v59, %v5273_v28  ;;  %v3725_v62 = vrot.slane %v4413_v8, %v5415_v43  ;;  %v3453_v53 = vadd.f32 %v3452_v22, %v4878_v49  ;;  %v3454_v58 = vpop.f32.mrb[35].mxu0 }
 0x94c   : > { %v4417_v3 = vpop.eup %4416  ;;  %v3637_v23 = vadd.f32 %v4413_v8, %v3634_v52  ;;  %v3710_v44 = vmul.f32 %v3704_v1, %v3689_v40  ;;  %v3757_v13 = vrot.slane %v4415_v24, %v5415_v43  ;;  %v5446_v32 = vadd.f32 %v3454_v58, %v4878_v49 }
 0x94d   : > { %v4419_v55 = vpop.eup %4418  ;;  %v3742_v60 = vmul.f32 %v3736_v46, %v3725_v62  ;;  %v3789_v28 = vrot.slane %v4417_v3, %v5415_v43  ;;  %v3548_v59 = vmax.f32 %v5594_v38, %v3453_v53 }
 0x94e   : > { %v4421_v22 = vpop.eup %4420  ;;  %v3640_v54 = vadd.f32 %v4415_v24, %v3637_v23  ;;  %v3713_v8 = vadd.f32 %v3710_v44, %v3677_v57  ;;  %v3774_v1 = vmul.f32 %v3768_v42, %v3757_v13  ;;  %v3821_v52 = vrot.slane %v4419_v55, %v5415_v43 }
 0x94f   : > { %v4423_v40 = vpop.eup %4422  ;;  %v3806_v30 = vmul.f32 %v3800_v45, %v3789_v28  ;;  %v3853_v5 = vrot.slane %v4421_v22, %v5415_v43  ;;  %v3551_v46 = vsub.f32 %v4898_v10, %v3548_v59  ;;  %v3560_v62 = vsub.f32 %v4901_v11, %v3548_v59 }
 0x950   : > { %v3643_v4 = vadd.f32 %v4417_v3, %v3640_v54  ;;  %v3745_v2 = vadd.f32 %v3742_v60, %v3713_v8  ;;  %v3838_v38 = vmul.f32 %v3832_v0, %v3821_v52  ;;  %v3885_v49 = vrot.slane %v4423_v40, %v5415_v43  ;;  %v4425_v54 = vpop.eup %4424 }
 0x951   : > { %v3870_v58 = vmul.f32 %v3864_v63, %v3853_v5  ;;  %v3554_v36 = vmul.f32 1.442695, %v3551_v46  ;;  %v3563_v24 = vmul.f32 1.442695, %v3560_v62  ;;  %v3569_v42 = vsub.f32 %v4965_v18, %v3548_v59 }
 0x952   : > { %v3646_v57 = vadd.f32 %v4419_v55, %v3643_v4  ;;  %v3777_v23 = vadd.f32 %v3774_v1, %v3745_v2  ;;  %v3902_v44 = vmul.f32 %v3896_v35, %v3885_v49  ;;  %v3578_v45 = vsub.f32 %v5035_v31, %v3548_v59 }
 0x953   : > { %4426 = vpow2.f32 %v3554_v36  ;;  %v3572_v13 = vmul.f32 1.442695, %v3569_v42  ;;  %v3587_v10 = vsub.f32 %v5095_v47, %v3548_v59  ;;  %v3596_v11 = vsub.f32 %v5162_v26, %v3548_v59 }
 0x954   : > { %v3649_v0 = vadd.f32 %v4421_v22, %v3646_v57  ;;  %v3809_v3 = vadd.f32 %v3806_v30, %v3777_v23  ;;  %4428 = vpow2.f32 %v3563_v24  ;;  %v3581_v63 = vmul.f32 1.442695, %v3578_v45  ;;  %v5596_v57 = vld [vmem:[#allocation4_spill] sm:$0xff] }
 0x955   : > { %4430 = vpow2.f32 %v3572_v13  ;;  %v3590_v60 = vmul.f32 1.442695, %v3587_v10  ;;  %v3599_v28 = vmul.f32 1.442695, %v3596_v11  ;;  %v3605_v18 = vsub.f32 %v5226_v61, %v3548_v59 }
 0x956   : > { %v3652_v4 = vadd.f32 %v4423_v40, %v3649_v0  ;;  %v3841_v35 = vadd.f32 %v3838_v38, %v3809_v3  ;;  %4432 = vpow2.f32 %v3581_v63  ;;  %v3614_v31 = vsub.f32 %v5339_v20, %v3548_v59  ;;  %v5599_v0 = vld [vmem:[#allocation10_spill] sm:$0xff] }
 0x957   : > { %4434 = vpow2.f32 %v3590_v60  ;;  %v3608_v36 = vmul.f32 1.442695, %v3605_v18  ;;  %v3623_v47 = vsub.f32 %v3453_v53, %v3548_v59  ;;  %v3917_v26 = vrot.slane %v4425_v54, %v5415_v43 }
 0x958   : > { %v3655_v55 = vadd.f32 %v4425_v54, %v3652_v4  ;;  %v3873_v22 = vadd.f32 %v3870_v58, %v3841_v35  ;;  %4436 = vpow2.f32 %v3599_v28  ;;  %v3617_v30 = vmul.f32 1.442695, %v3614_v31  ;;  %v5598_v54 = vld [vmem:[#allocation9_spill] sm:$0xff] }
 0x959   : > { %v3734_v8 = vsel %vm1135_vm8, %v5362_v29, %v5366_v12  ;;  %4438 = vpow2.f32 %v3608_v36  ;;  %v3626_v61 = vmul.f32 1.442695, %v3623_v47  ;;  %v5595_v1 = vmax.f32 %v5245_v41, %v5342_v39 }
 0x95a   : > { %v3766_v53 = vsel %vm1479_vm9, %v5374_v15, %v5372_v14  ;;  %4440 = vrcp.f32 %v3655_v55  ;;  %v3905_v59 = vadd.f32 %v3902_v44, %v3873_v22  ;;  %v3934_v52 = vmul.f32 %v3928_v25, %v3917_v26 }
 0x95b   : > { %v5467_v20 = vmax.f32 %v5595_v1, %v5446_v32  ;;  %4442 = vpow2.f32 %v3617_v30  ;;  %v3862_v3 = vsel %vm2511_vm12, %v5599_v0, %v5598_v54 }
 0x95c   : > { %4444 = vpow2.f32 %v3626_v61  ;;  %v3937_v41 = vadd.f32 %v3934_v52, %v3905_v59 }
 0x95d   : > { %v3552_v40 = vsub.f32 %v4906_v16, %v5467_v20  ;;  %v3561_v29 = vsub.f32 %v4909_v17, %v5467_v20  ;;  %v3570_v12 = vsub.f32 %v4972_v21, %v5467_v20  ;;  %v3579_v5 = vsub.f32 %v5040_v19, %v5467_v20  ;;  %v4427_v46 = vpop.eup %4426 }
 0x95e   : > { %v3588_v15 = vsub.f32 %v5101_v51, %v5467_v20  ;;  %v3597_v16 = vsub.f32 %v5166_v9, %v5467_v20  ;;  %v4429_v38 = vpop.eup %4428  ;;  %v3798_v17 = vsel %vm1823_vm10, %v5380_v7, %v5378_v56  ;;  %v3666_v21 = vrot.slane %v4427_v46, %v5415_v43 }
 0x95f   : > { %v3556_v25 = vmul.f32 1.442695, %v3552_v40  ;;  %v3565_v62 = vmul.f32 1.442695, %v3561_v29  ;;  %v3574_v2 = vmul.f32 1.442695, %v3570_v12  ;;  %v3606_v19 = vsub.f32 %v5230_v48, %v5467_v20  ;;  %v4431_v58 = vpop.eup %4430 }
 0x960   : > { %v3583_v49 = vmul.f32 1.442695, %v3579_v5  ;;  %v3830_v51 = vsel %vm2167_vm11, %v5386_v34, %v5384_v33  ;;  %v3632_v24 = vadd.f32 %v4429_v38, %v4427_v46  ;;  %v3681_v9 = vrot.slane %v4429_v38, %v5415_v43  ;;  %v4433_v42 = vpop.eup %4432  ;;  %v5597_v48 = vld [vmem:[#allocation5_spill] sm:$0xff] }
 0x961   : > { %4446 = vpow2.f32 %v3556_v25  ;;  %v3675_v23 = vmul.f32 %v3666_v21, %v5596_v57  ;;  %v3717_v7 = vrot.slane %v4431_v58, %v5415_v43  ;;  %v3592_v44 = vmul.f32 1.442695, %v3588_v15  ;;  %v4435_v45 = vpop.eup %4434  ;;  %v5601_v40 = vld [vmem:[#allocation13_spill] sm:$0xff] }
 0x962   : > { %4448 = vpow2.f32 %v3565_v62  ;;  %v3635_v13 = vadd.f32 %v4431_v58, %v3632_v24  ;;  %v3708_v10 = vmul.f32 %v5597_v48, %v3681_v9  ;;  %v3749_v11 = vrot.slane %v4433_v42, %v5415_v43  ;;  %v4437_v34 = vpop.eup %4436  ;;  %v5603_v48 = vld [vmem:[#allocation6_spill] sm:$0xff] }
 0x963   : > { %4450 = vpow2.f32 %v3574_v2  ;;  %v3601_v63 = vmul.f32 1.442695, %v3597_v16  ;;  %v3615_v60 = vsub.f32 %v5342_v39, %v5467_v20  ;;  %v4439_v28 = vpop.eup %4438  ;;  %v3740_v35 = vmul.f32 %v3734_v8, %v3717_v7  ;;  %v5600_v39 = vld [vmem:[#allocation12_spill] sm:$0xff] }
 0x964   : > { %4452 = vpow2.f32 %v3583_v49  ;;  %v3638_v18 = vadd.f32 %v4433_v42, %v3635_v13  ;;  %v3711_v4 = vadd.f32 %v3708_v10, %v3675_v23  ;;  %v3781_v31 = vrot.slane %v4435_v45, %v5415_v43  ;;  %v4441_v36 = vpop.eup %4440  ;;  %v5602_v23 = vld [vmem:[#allocation3_spill] sm:$0xff] }
 0x965   : > { %v3772_v47 = vmul.f32 %v3766_v53, %v3749_v11  ;;  %v3813_v26 = vrot.slane %v4437_v34, %v5415_v43  ;;  %4454 = vpow2.f32 %v3592_v44  ;;  %v3610_v55 = vmul.f32 1.442695, %v3606_v19  ;;  %v4443_v22 = vpop.eup %4442 }
 0x966   : > { %v3641_v30 = vadd.f32 %v4435_v45, %v3638_v18  ;;  %v3743_v61 = vadd.f32 %v3740_v35, %v3711_v4  ;;  %v3949_v1 = vrot.slane %v4441_v36, %v5415_v43  ;;  %v3619_v59 = vmul.f32 1.442695, %v3615_v60  ;;  %v4445_v52 = vpop.eup %4444 }
 0x967   : > { %v3894_v29 = vsel %vm2855_vm13, %v5601_v40, %v5600_v39  ;;  %v3845_v8 = vrot.slane %v4439_v28, %v5415_v43  ;;  %4456 = vpow2.f32 %v3601_v63  ;;  %v3624_v53 = vsub.f32 %v5446_v32, %v5467_v20 }
 0x968   : > { %v3644_v12 = vadd.f32 %v4437_v34, %v3641_v30  ;;  %v3775_v5 = vadd.f32 %v3772_v47, %v3743_v61  ;;  %v3804_v15 = vmul.f32 %v3798_v17, %v3781_v31  ;;  %v3952_v46 = vmul.f32 %v3949_v1, %v3937_v41 }
 0x969   : > { %v3926_v25 = vsel %vm3199_vm14, %v5413_v6, %v5411_v50  ;;  %v3877_v62 = vrot.slane %v4443_v22, %v5415_v43  ;;  %4458 = vpow2.f32 %v3610_v55  ;;  %v3628_v2 = vmul.f32 1.442695, %v3624_v53  ;;  %v5606_v53 = vld [vmem:[#allocation11_spill] sm:$0xff] }
 0x96a   : > { %v3647_v38 = vadd.f32 %v4439_v28, %v3644_v12  ;;  %v3807_v21 = vadd.f32 %v3804_v15, %v3775_v5  ;;  %v3836_v49 = vmul.f32 %v3830_v51, %v3813_v26  ;;  %3955 = vst [vmem:[%s5513_s14 + $0x10] sm:$0xff] %v3952_v46  ;;  %4460 = vpow2.f32 %v3619_v59 }
 0x96b   : > { %v4447_v16 = vpop.eup %4446  ;;  %v3909_v32 = vrot.slane %v4445_v52, %v5415_v43  ;;  %v3868_v20 = vmul.f32 %v3862_v3, %v3845_v8  ;;  %4462 = vpow2.f32 %v3628_v2  ;;  %v3900_v57 = vmul.f32 %v3894_v29, %v3877_v62  ;;  %v5604_v3 = vld [vmem:[#allocation7_spill] sm:$0xff]  ;;  %v5605_v29 = vld [vmem:[#allocation8_spill] sm:$0xff] }
 0x96c   : > { %v4449_v19 = vpop.eup %4448  ;;  %v3670_v41 = vrot.slane %v4447_v16, %v5415_v43  ;;  %v3650_v58 = vadd.f32 %v4443_v22, %v3647_v38  ;;  %v3839_v6 = vadd.f32 %v3836_v49, %v3807_v21  ;;  %v3767_v34 = vsel %vm1479_vm9, %v5372_v14, %v5376_v37 }
 0x96d   : > { %v4451_v17 = vpop.eup %4450  ;;  %v3633_v24 = vadd.f32 %v4449_v19, %v4447_v16  ;;  %v3685_v9 = vrot.slane %v4449_v19, %v5415_v43  ;;  %v3932_v0 = vmul.f32 %v3926_v25, %v3909_v32  ;;  %v3799_v14 = vsel %vm1823_vm10, %v5378_v56, %v5382_v27  ;;  %v5607_v27 = vld [vmem:[#allocation14_spill] sm:$0xff] }
 0x96e   : > { %v4453_v42 = vpop.eup %4452  ;;  %v3676_v7 = vmul.f32 %v3670_v41, %v5602_v23  ;;  %v3721_v51 = vrot.slane %v4451_v17, %v5415_v43  ;;  %v3653_v44 = vadd.f32 %v4445_v52, %v3650_v58  ;;  %v3871_v45 = vadd.f32 %v3868_v20, %v3839_v6 }
 0x96f   : > { %v3636_v13 = vadd.f32 %v4451_v17, %v3633_v24  ;;  %v3709_v10 = vmul.f32 %v5603_v48, %v3685_v9  ;;  %v4455_v11 = vpop.eup %4454  ;;  %v3753_v60 = vrot.slane %v4453_v42, %v5415_v43  ;;  %v3831_v8 = vsel %vm2167_vm11, %v5384_v33, %v5605_v29  ;;  %v5608_v33 = vld [vmem:[#allocation15_spill] sm:$0xff] }
 0x970   : > { %v3741_v63 = vmul.f32 %v5604_v3, %v3721_v51  ;;  %4464 = vrcp.f32 %v3653_v44  ;;  %v3903_v28 = vadd.f32 %v3900_v57, %v3871_v45  ;;  %v3785_v36 = vrot.slane %v4455_v11, %v5415_v43 }
 0x971   : > { %v3639_v18 = vadd.f32 %v4453_v42, %v3636_v13  ;;  %v3712_v4 = vadd.f32 %v3709_v10, %v3676_v7  ;;  %v4457_v35 = vpop.eup %4456  ;;  %v3773_v31 = vmul.f32 %v3767_v34, %v3753_v60  ;;  %v3863_v12 = vsel %vm2511_vm12, %v5598_v54, %v5606_v53 }
 0x972   : > { %v3935_v47 = vadd.f32 %v3932_v0, %v3903_v28  ;;  %v3817_v22 = vrot.slane %v4457_v35, %v5415_v43  ;;  %v3805_v59 = vmul.f32 %v3799_v14, %v3785_v36  ;;  %v3895_v25 = vsel %vm2855_vm13, %v5600_v39, %v5607_v27 }
 0x973   : > { %v3642_v26 = vadd.f32 %v4455_v11, %v3639_v18  ;;  %v3744_v55 = vadd.f32 %v3741_v63, %v3712_v4  ;;  %v4459_v30 = vpop.eup %4458  ;;  %v3927_v54 = vsel %vm3199_vm14, %v5411_v50, %v5608_v33 }
 0x974   : > { %v4461_v37 = vpop.eup %4460  ;;  %v3849_v52 = vrot.slane %v4459_v30, %v5415_v43  ;;  %v3837_v46 = vmul.f32 %v3831_v8, %v3817_v22 }
 0x975   : > { %v3645_v61 = vadd.f32 %v4457_v35, %v3642_v26  ;;  %v3776_v1 = vadd.f32 %v3773_v31, %v3744_v55  ;;  %v4463_v40 = vpop.eup %4462  ;;  %v3881_v56 = vrot.slane %v4461_v37, %v5415_v43 }
 0x976   : > { %v3869_v16 = vmul.f32 %v3863_v12, %v3849_v52  ;;  %v3913_v38 = vrot.slane %v4463_v40, %v5415_v43 }
 0x977   : > { %v3648_v5 = vadd.f32 %v4459_v30, %v3645_v61  ;;  %v3808_v15 = vadd.f32 %v3805_v59, %v3776_v1  ;;  %v3901_v32 = vmul.f32 %v3895_v25, %v3881_v56 }
 0x978   : > { %v3933_v39 = vmul.f32 %v3927_v54, %v3913_v38 }
 0x979   : > { %v3651_v62 = vadd.f32 %v4461_v37, %v3648_v5  ;;  %v3840_v2 = vadd.f32 %v3837_v46, %v3808_v15 }
 0x97a   : > { %v4465_v21 = vpop.eup %4464 }
 0x97b   : > { %v3654_v49 = vadd.f32 %v4463_v40, %v3651_v62  ;;  %v3872_v19 = vadd.f32 %v3869_v16, %v3840_v2  ;;  %v3941_v20 = vrot.slane %v4465_v21, %v5415_v43 }
 0x97d   : > { %4466 = vrcp.f32 %v3654_v49  ;;  %v3904_v41 = vadd.f32 %v3901_v32, %v3872_v19  ;;  %v3950_v17 = vmul.f32 %v3941_v20, %v3935_v47 }
 0x97f   : > { %v3936_v58 = vadd.f32 %v3933_v39, %v3904_v41  ;;  %3953 = vst [vmem:[%s5513_s14] sm:$0xff] %v3950_v17 }
 0x987   : > { %v4467_v6 = vpop.eup %4466 }
 0x988   : > { %v3945_v24 = vrot.slane %v4467_v6, %v5415_v43 }
 0x98a   : > { %v3951_v9 = vmul.f32 %v3945_v24, %v3936_v58 }
 0x98c   : > { %3954 = vst [vmem:[%s5513_s14 + $0x8] sm:$0xff] %v3951_v9 }
 0x98d PF: > { %s20_s11 = sadd.s32 1, %s4476_s11  }
 0x98e   : > { %p17_p4 = scmp.ge.s32.totalorder %s20_s11, 4  }
 0x990   :  { %19 = sbr.rel (!%p17_p4) target bundleno = 2 (0x2), region = 92 }

</bundles_post_ra>
